<compile_context>
chip_gen: v6e
topology: v6e:2x2x1
jax: 0.10.0
libtpu: 0.0.40
codegen_flags: <defaults>
</compile_context>

<pallas_src>
import functools

import jax
import jax.numpy as jnp
from jax.experimental import pallas as pl
from jax.experimental.pallas import tpu as pltpu


# --------------------------------------------------------------------------
# Fused kernel: time-batched encoder + input projection per row-block, then
# (on the last grid step) the serial GRU recurrence + residual + output head.
# --------------------------------------------------------------------------
def _fused_kernel(residual, T, B, t_blk, n_rb, H3, Gp,
                  bev_ref, front_ref, ego_ref,
                  wb_ref, bb_ref, wf_ref, bf_ref, we_ref, be_ref,
                  wib_ref, wif_ref, wie_ref, bi_ref,
                  whh_ref, bh_ref, wo_ref, bo_ref,
                  q_ref,
                  gi_ref):
    i = pl.program_id(0)
    r_blk = bev_ref.shape[0]
    bf16, f32 = jnp.bfloat16, jnp.float32

    # ---- time-batched sensor encoder (MXU M = r_blk rows of T*B at once) ----
    bev_feat = jax.nn.relu(
        jnp.dot(bev_ref[...], wb_ref[...], preferred_element_type=f32)
        + bb_ref[...])
    front_feat = jax.nn.relu(
        jnp.dot(front_ref[...], wf_ref[...], preferred_element_type=f32)
        + bf_ref[...])
    ego_feat = jax.nn.relu(
        jnp.dot(ego_ref[...], we_ref[...], preferred_element_type=f32)
        + be_ref[...])

    # ---- GRU input projection, WITHOUT a lane concat of 32-wide features:
    #      three partial matmuls against the row-split, gate-padded W_ih.
    #      Result is one lane-dense (r_blk, 3*Gp) slab (gates r|z|n, each Gp).
    gi = (jnp.dot(bev_feat.astype(bf16), wib_ref[...], preferred_element_type=f32)
          + jnp.dot(front_feat.astype(bf16), wif_ref[...], preferred_element_type=f32)
          + jnp.dot(ego_feat.astype(bf16), wie_ref[...], preferred_element_type=f32)
          + bi_ref[...])

    # Stash per-timestep (B, 3*Gp) slices into the persistent VMEM scratch so
    # the recurrence never touches HBM (fusion of the old two pallas_calls).
    t0 = 0 if n_rb == 1 else i * t_blk
    for tt in range(t_blk):
        gi_ref[t0 + tt] = gi[tt * B:(tt + 1) * B, :]

    # ---- last grid step: serial GRU recurrence + residual + output head ----
    @pl.when(i == n_rb - 1)
    def _():
        # Encoder output at t = T-1 (last B rows of this block), zero-padded
        # from H3 to Gp lanes for the residual add (one-time concat only).
        x_last = jnp.concatenate(
            [bev_feat[r_blk - B:, :], front_feat[r_blk - B:, :],
             ego_feat[r_blk - B:, :], jnp.zeros((B, Gp - H3), f32)], axis=-1)

        # TODO(synk): W_hh could additionally be held resident in the MXU via
        #             pltpu.matmul_push_rhs (same RHS every step) to shave the
        #             per-step weight-push latency on the serial path.
        def step(t, h_prev):
            gi_t = gi_ref[t]                                     # (B, 3*Gp)
            gh = jnp.dot(h_prev.astype(bf16), whh_ref[...],
                         preferred_element_type=f32) + bh_ref[...]
            r = jax.nn.sigmoid(gi_t[:, :Gp] + gh[:, :Gp])
            z = jax.nn.sigmoid(gi_t[:, Gp:2 * Gp] + gh[:, Gp:2 * Gp])
            n = jnp.tanh(gi_t[:, 2 * Gp:] + r * gh[:, 2 * Gp:])
            return (1.0 - z) * n + z * h_prev

        h0 = jnp.zeros((B, Gp), f32)
        h_n = jax.lax.fori_loop(0, T, step, h0, unroll=min(T, 8))

        if residual:
            h_n = h_n + x_last
        q = jnp.dot(jax.nn.relu(h_n).astype(bf16), wo_ref[...],
                    preferred_element_type=f32) + bo_ref[...]
        q_ref[...] = q.astype(q_ref.dtype)


# --------------------------------------------------------------------------
# Parameter preparation (done ONCE, outside the forward).
# --------------------------------------------------------------------------
def _round_up(x, m):
    return ((x + m - 1) // m) * m


def _pad_gates(w, H3, Gp):
    """(rows, 3*H3) -> (rows, 3*Gp): each gate's H3 columns zero-padded to Gp."""
    rows = w.shape[0]
    out = jnp.zeros((rows, 3 * Gp), w.dtype)
    for g in range(3):
        out = out.at[:, g * Gp:g * Gp + H3].set(w[:, g * H3:(g + 1) * H3])
    return out


def prepare_params(params, *, h_size):
    """bf16 casts, per-gate 128-lane padding and row-splits, hoisted out of the
    per-call forward (inference-style)."""
    h = h_size
    H3 = 3 * h
    Gp = _round_up(H3, 128)
    f32, bf16 = jnp.float32, jnp.bfloat16

    w_i = _pad_gates(params["w_ih"].astype(f32), H3, Gp)          # (H3, 3*Gp)
    b_i = _pad_gates(params["b_ih"].astype(f32), H3, Gp)          # (1, 3*Gp)
    w_h = jnp.zeros((Gp, 3 * Gp), f32).at[:H3].set(
        _pad_gates(params["w_hh"].astype(f32), H3, Gp))           # (Gp, 3*Gp)
    b_h = _pad_gates(params["b_hh"].astype(f32), H3, Gp)          # (1, 3*Gp)
    w_out = jnp.zeros((Gp, params["w_out"].shape[1]), f32).at[:H3].set(
        params["w_out"].astype(f32))                              # (Gp, A)

    return {
        "w_bev": params["w_bev"].astype(bf16), "b_bev": params["b_bev"].astype(f32),
        "w_front": params["w_front"].astype(bf16), "b_front": params["b_front"].astype(f32),
        "w_ego": params["w_ego"].astype(bf16), "b_ego": params["b_ego"].astype(f32),
        "w_i_bev": w_i[:h].astype(bf16),          # rows fed by bev features
        "w_i_front": w_i[h:2 * h].astype(bf16),   # rows fed by front features
        "w_i_ego": w_i[2 * h:].astype(bf16),      # rows fed by ego features
        "b_i": b_i,
        "w_hh": w_h.astype(bf16), "b_h": b_h,
        "w_out": w_out.astype(bf16), "b_out": params["b_out"].astype(f32),
    }


# --------------------------------------------------------------------------
# Wrapper
# --------------------------------------------------------------------------
def _pick_time_block(T, B, target_rows=512):
    """Timesteps per row-block: r_blk = t_blk*B rows, 16-sublane aligned for the
    bf16 inputs, or full extent when T*B is small."""
    if T * B <= target_rows:
        return T
    best = None
    for t_blk in range(1, T + 1):
        if T % t_blk:
            continue
        rb = t_blk * B
        if rb <= target_rows and rb % 16 == 0:
            best = t_blk
    if best is None:
        # TODO(synk): pad T*B (or use a masked tail block) instead of falling
        #             back to a full-extent block at awkward shapes.
        return T
    return best


def _full_spec(arr):
    nd = arr.ndim
    return pl.BlockSpec(arr.shape, lambda i, _nd=nd: (0,) * _nd)


def hd_drive_dqn_v0_gru(bev_Xs, front_Xs, acc_Xs, comp_Xs, gyro_Xs, vel_Xs, act_Xs,
                        prepared, *, residual=True):
    """bev_Xs/front_Xs: (T, B, C, H, W); ego sensors: (T, B, d_i); act_Xs unused.
    `prepared` = prepare_params(...) (computed once)."""
    del act_Xs                                  # unused in the reference forward
    T, B = bev_Xs.shape[0], bev_Xs.shape[1]
    assert T >= 1, "need at least one timestep"
    f_img = bev_Xs.shape[2] * bev_Xs.shape[3] * bev_Xs.shape[4]
    TB = T * B

    # Flatten time into the matmul M dimension; heavy paths in bf16 (f32 acc).
    bev2d = bev_Xs.reshape(TB, f_img).astype(jnp.bfloat16)
    front2d = front_Xs.reshape(TB, f_img).astype(jnp.bfloat16)
    ego2d = jnp.concatenate([acc_Xs, comp_Xs, gyro_Xs, vel_Xs],
                            axis=-1).reshape(TB, -1).astype(jnp.bfloat16)
    ego_dim = ego2d.shape[-1]

    h = prepared["w_bev"].shape[1]
    H3 = 3 * h                                   # GRU hidden size
    Gp = prepared["w_hh"].shape[0]               # per-gate width padded to 128
    A = prepared["w_out"].shape[1]               # simple_space_dim

    t_blk = _pick_time_block(T, B)
    r_blk = t_blk * B
    n_rb = TB // r_blk

    kernel = functools.partial(_fused_kernel, residual, T, B, t_blk, n_rb, H3, Gp)

    # NOTE(v7x): the grid-invariant weight inputs could be single-buffered
    # (pipeline_mode=pl.Buffered(1)) and the row block re-derived for the
    # 64 MiB VMEM budget; at these sizes the defaults fit comfortably.
    grid_spec = pltpu.PrefetchScalarGridSpec(
        num_scalar_prefetch=0,
        grid=(n_rb,),
        in_specs=[
            pl.BlockSpec((r_blk, f_img), lambda i: (i, 0)),      # bev rows
            pl.BlockSpec((r_blk, f_img), lambda i: (i, 0)),      # front rows
            pl.BlockSpec((r_blk, ego_dim), lambda i: (i, 0)),    # ego rows
            _full_spec(prepared["w_bev"]), _full_spec(prepared["b_bev"]),
            _full_spec(prepared["w_front"]), _full_spec(prepared["b_front"]),
            _full_spec(prepared["w_ego"]), _full_spec(prepared["b_ego"]),
            _full_spec(prepared["w_i_bev"]), _full_spec(prepared["w_i_front"]),
            _full_spec(prepared["w_i_ego"]), _full_spec(prepared["b_i"]),
            _full_spec(prepared["w_hh"]), _full_spec(prepared["b_h"]),
            _full_spec(prepared["w_out"]), _full_spec(prepared["b_out"]),
        ],
        out_specs=pl.BlockSpec((B, A), lambda i: (0, 0)),
        # gi for ALL timesteps stays resident in VMEM across the grid (fusion).
        # TODO(synk): for T*B*3*Gp that overflows VMEM, fall back to the
        #             two-kernel (HBM round trip) variant.
        scratch_shapes=[pltpu.VMEM((T, B, 3 * Gp), jnp.float32)],
    )

    return pl.pallas_call(
        kernel,
        out_shape=jax.ShapeDtypeStruct((B, A), jnp.float32),
        grid_spec=grid_spec,
        compiler_params=pltpu.CompilerParams(
            # gi scratch carries across row blocks -> serial grid axis.
            dimension_semantics=("arbitrary",)),
    )(bev2d, front2d, ego2d,
      prepared["w_bev"], prepared["b_bev"],
      prepared["w_front"], prepared["b_front"],
      prepared["w_ego"], prepared["b_ego"],
      prepared["w_i_bev"], prepared["w_i_front"], prepared["w_i_ego"],
      prepared["b_i"],
      prepared["w_hh"], prepared["b_h"],
      prepared["w_out"], prepared["b_out"])


# --------------------------------------------------------------------------
# Pure-JAX mirror (same bf16 weights/casts) for validation.
# --------------------------------------------------------------------------
def _reference_forward(bev2d, front2d, ego2d, p, T, B, residual):
    f32, bf16 = jnp.float32, jnp.bfloat16
    Gp = p["w_hh"].shape[0]
    H3 = 3 * p["w_bev"].shape[1]

    bev_f = jax.nn.relu(jnp.dot(bev2d, p["w_bev"], preferred_element_type=f32) + p["b_bev"])
    fro_f = jax.nn.relu(jnp.dot(front2d, p["w_front"], preferred_element_type=f32) + p["b_front"])
    ego_f = jax.nn.relu(jnp.dot(ego2d, p["w_ego"], preferred_element_type=f32) + p["b_ego"])

    gi = (jnp.dot(bev_f.astype(bf16), p["w_i_bev"], preferred_element_type=f32)
          + jnp.dot(fro_f.astype(bf16), p["w_i_front"], preferred_element_type=f32)
          + jnp.dot(ego_f.astype(bf16), p["w_i_ego"], preferred_element_type=f32)
          + p["b_i"]).reshape(T, B, 3 * Gp)

    h = jnp.zeros((B, Gp), f32)
    for t in range(T):
        gh = jnp.dot(h.astype(bf16), p["w_hh"], preferred_element_type=f32) + p["b_h"]
        r = jax.nn.sigmoid(gi[t, :, :Gp] + gh[:, :Gp])
        z = jax.nn.sigmoid(gi[t, :, Gp:2 * Gp] + gh[:, Gp:2 * Gp])
        n = jnp.tanh(gi[t, :, 2 * Gp:] + r * gh[:, 2 * Gp:])
        h = (1.0 - z) * n + z * h

    if residual:
        x_last = jnp.concatenate(
            [bev_f[-B:], fro_f[-B:], ego_f[-B:], jnp.zeros((B, Gp - H3), f32)],
            axis=-1)
        h = h + x_last
    return jnp.dot(jax.nn.relu(h).astype(bf16), p["w_out"],
                   preferred_element_type=f32) + p["b_out"]


def init_params(key, *, f_img, ego_dim, h_size, simple_space_dim):
    """Deterministic synthetic parameter init (uniform, small scale)."""
    H3 = 3 * h_size
    ks = jax.random.split(key, 8)
    u = lambda k, shape, scale: jax.random.uniform(
        k, shape, jnp.float32, -scale, scale)
    return {
        # sensor encoder (flatten + linear per modality)
        "w_bev": u(ks[0], (f_img, h_size), 0.02),
        "b_bev": jnp.zeros((1, h_size), jnp.float32),
        "w_front": u(ks[1], (f_img, h_size), 0.02),
        "b_front": jnp.zeros((1, h_size), jnp.float32),
        "w_ego": u(ks[2], (ego_dim, h_size), 0.1),
        "b_ego": jnp.zeros((1, h_size), jnp.float32),
        # GRU (PyTorch layout transposed; gates stacked [r, z, n] along cols)
        "w_ih": u(ks[3], (H3, 3 * H3), 0.05),
        "b_ih": u(ks[4], (1, 3 * H3), 0.05),
        "w_hh": u(ks[5], (H3, 3 * H3), 0.05),
        "b_hh": u(ks[6], (1, 3 * H3), 0.05),
        # output head
        "w_out": u(ks[7], (H3, simple_space_dim), 0.1),
        "b_out": jnp.zeros((1, simple_space_dim), jnp.float32),
    }


if __name__ == "__main__":
    # Small shapes consistent with the module's forward.
    T, B = 8, 2
    C, Him, Wim = 4, 16, 16
    h_size = 32
    simple_space_dim = 8
    acc_d, comp_d, gyro_d, vel_d, act_d = 3, 2, 3, 2, 2

    key = jax.random.PRNGKey(0)
    k_in, k_par = jax.random.split(key)
    ki = jax.random.split(k_in, 7)

    bev_Xs = jax.random.normal(ki[0], (T, B, C, Him, Wim), jnp.float32)
    front_Xs = jax.random.normal(ki[1], (T, B, C, Him, Wim), jnp.float32)
    acc_Xs = jax.random.normal(ki[2], (T, B, acc_d), jnp.float32)
    comp_Xs = jax.random.normal(ki[3], (T, B, comp_d), jnp.float32)
    gyro_Xs = jax.random.normal(ki[4], (T, B, gyro_d), jnp.float32)
    vel_Xs = jax.random.normal(ki[5], (T, B, vel_d), jnp.float32)
    act_Xs = jax.random.normal(ki[6], (T, B, act_d), jnp.float32)

    params = init_params(
        k_par,
        f_img=C * Him * Wim,
        ego_dim=acc_d + comp_d + gyro_d + vel_d,
        h_size=h_size,
        simple_space_dim=simple_space_dim,
    )
    prepared = prepare_params(params, h_size=h_size)   # once, outside the forward

    q = hd_drive_dqn_v0_gru(bev_Xs, front_Xs, acc_Xs, comp_Xs, gyro_Xs, vel_Xs,
                            act_Xs, prepared, residual=True)
    q = jax.block_until_ready(q)
    assert q.shape == (B, simple_space_dim) and q.dtype == jnp.float32

    # Validate against the pure-JAX mirror (same bf16 weights / casts).
    f_img = C * Him * Wim
    bev2d = bev_Xs.reshape(T * B, f_img).astype(jnp.bfloat16)
    front2d = front_Xs.reshape(T * B, f_img).astype(jnp.bfloat16)
    ego2d = jnp.concatenate([acc_Xs, comp_Xs, gyro_Xs, vel_Xs],
                            axis=-1).reshape(T * B, -1).astype(jnp.bfloat16)
    q_ref = _reference_forward(bev2d, front2d, ego2d, prepared, T, B, True)
    max_err = float(jnp.max(jnp.abs(q - q_ref)))
    assert jnp.allclose(q, q_ref, atol=5e-2, rtol=5e-2), max_err

    print("KERNEL_OK")
</pallas_src>

<mosaic_0001>
module attributes {stable_mosaic.version = 11 : i64} {
  func.func @_fused_kernel(%arg0: i32, %arg1: memref<16x1024xbf16, #tpu.memory_space<vmem>>, %arg2: memref<16x1024xbf16, #tpu.memory_space<vmem>>, %arg3: memref<16x10xbf16, #tpu.memory_space<vmem>>, %arg4: memref<1024x32xbf16, #tpu.memory_space<vmem>>, %arg5: memref<1x32xf32, #tpu.memory_space<vmem>>, %arg6: memref<1024x32xbf16, #tpu.memory_space<vmem>>, %arg7: memref<1x32xf32, #tpu.memory_space<vmem>>, %arg8: memref<10x32xbf16, #tpu.memory_space<vmem>>, %arg9: memref<1x32xf32, #tpu.memory_space<vmem>>, %arg10: memref<32x384xbf16, #tpu.memory_space<vmem>>, %arg11: memref<32x384xbf16, #tpu.memory_space<vmem>>, %arg12: memref<32x384xbf16, #tpu.memory_space<vmem>>, %arg13: memref<1x384xf32, #tpu.memory_space<vmem>>, %arg14: memref<128x384xbf16, #tpu.memory_space<vmem>>, %arg15: memref<1x384xf32, #tpu.memory_space<vmem>>, %arg16: memref<128x8xbf16, #tpu.memory_space<vmem>>, %arg17: memref<1x8xf32, #tpu.memory_space<vmem>>, %arg18: memref<2x8xf32, #tpu.memory_space<vmem>>, %arg19: memref<8x2x384xf32, #tpu.memory_space<vmem>>) attributes {dimension_semantics = [#tpu.dimension_semantics<arbitrary>], iteration_bounds = array<i64: 1>, scalar_prefetch = 0 : i64, scratch_operands = 1 : i64, tpu.core_type = #tpu.core_type<tc>, window_params = [{transform_indices = @transform_0, window_bounds = array<i64: 16, 1024>}, {transform_indices = @transform_1, window_bounds = array<i64: 16, 1024>}, {transform_indices = @transform_2, window_bounds = array<i64: 16, 10>}, {pipeline_mode = #tpu.pipeline_mode<synchronous>, transform_indices = @transform_3, window_bounds = array<i64: 1024, 32>}, {pipeline_mode = #tpu.pipeline_mode<synchronous>, transform_indices = @transform_4, window_bounds = array<i64: 1, 32>}, {pipeline_mode = #tpu.pipeline_mode<synchronous>, transform_indices = @transform_5, window_bounds = array<i64: 1024, 32>}, {pipeline_mode = #tpu.pipeline_mode<synchronous>, transform_indices = @transform_6, window_bounds = array<i64: 1, 32>}, {pipeline_mode = #tpu.pipeline_mode<synchronous>, transform_indices = @transform_7, window_bounds = array<i64: 10, 32>}, {pipeline_mode = #tpu.pipeline_mode<synchronous>, transform_indices = @transform_8, window_bounds = array<i64: 1, 32>}, {pipeline_mode = #tpu.pipeline_mode<synchronous>, transform_indices = @transform_9, window_bounds = array<i64: 32, 384>}, {pipeline_mode = #tpu.pipeline_mode<synchronous>, transform_indices = @transform_10, window_bounds = array<i64: 32, 384>}, {pipeline_mode = #tpu.pipeline_mode<synchronous>, transform_indices = @transform_11, window_bounds = array<i64: 32, 384>}, {pipeline_mode = #tpu.pipeline_mode<synchronous>, transform_indices = @transform_12, window_bounds = array<i64: 1, 384>}, {pipeline_mode = #tpu.pipeline_mode<synchronous>, transform_indices = @transform_13, window_bounds = array<i64: 128, 384>}, {pipeline_mode = #tpu.pipeline_mode<synchronous>, transform_indices = @transform_14, window_bounds = array<i64: 1, 384>}, {pipeline_mode = #tpu.pipeline_mode<synchronous>, transform_indices = @transform_15, window_bounds = array<i64: 128, 8>}, {pipeline_mode = #tpu.pipeline_mode<synchronous>, transform_indices = @transform_16, window_bounds = array<i64: 1, 8>}, {pipeline_mode = #tpu.pipeline_mode<synchronous>, transform_indices = @transform_17, window_bounds = array<i64: 2, 8>}]} {
    %c0 = arith.constant 0 : index
    %c0_0 = arith.constant 0 : index
    %0 = vector.load %arg1[%c0, %c0_0] : memref<16x1024xbf16, #tpu.memory_space<vmem>>, vector<16x1024xbf16>
    %c0_1 = arith.constant 0 : index
    %c0_2 = arith.constant 0 : index
    %1 = vector.load %arg4[%c0_1, %c0_2] : memref<1024x32xbf16, #tpu.memory_space<vmem>>, vector<1024x32xbf16>
    %cst = arith.constant dense<0.000000e+00> : vector<16x32xf32>
    %2 = tpu.matmul %0, %1, %cst {dimension_numbers = #tpu.dot_dimension_numbers<[1], [0], [0], [1], [0, 0, 1, 1], [], []>} : vector<16x1024xbf16>, vector<1024x32xbf16>, vector<16x32xf32> -> vector<16x32xf32>
    %c0_3 = arith.constant 0 : index
    %c0_4 = arith.constant 0 : index
    %3 = vector.load %arg5[%c0_3, %c0_4] : memref<1x32xf32, #tpu.memory_space<vmem>>, vector<1x32xf32>
    %4 = vector.broadcast %3 : vector<1x32xf32> to vector<16x32xf32>
    %5 = arith.addf %2, %4 : vector<16x32xf32>
    %cst_5 = arith.constant 0.000000e+00 : f32
    %6 = vector.broadcast %cst_5 : f32 to vector<16x32xf32>
    %7 = arith.maximumf %5, %6 : vector<16x32xf32>
    %c0_6 = arith.constant 0 : index
    %c0_7 = arith.constant 0 : index
    %8 = vector.load %arg2[%c0_6, %c0_7] : memref<16x1024xbf16, #tpu.memory_space<vmem>>, vector<16x1024xbf16>
    %c0_8 = arith.constant 0 : index
    %c0_9 = arith.constant 0 : index
    %9 = vector.load %arg6[%c0_8, %c0_9] : memref<1024x32xbf16, #tpu.memory_space<vmem>>, vector<1024x32xbf16>
    %cst_10 = arith.constant dense<0.000000e+00> : vector<16x32xf32>
    %10 = tpu.matmul %8, %9, %cst_10 {dimension_numbers = #tpu.dot_dimension_numbers<[1], [0], [0], [1], [0, 0, 1, 1], [], []>} : vector<16x1024xbf16>, vector<1024x32xbf16>, vector<16x32xf32> -> vector<16x32xf32>
    %c0_11 = arith.constant 0 : index
    %c0_12 = arith.constant 0 : index
    %11 = vector.load %arg7[%c0_11, %c0_12] : memref<1x32xf32, #tpu.memory_space<vmem>>, vector<1x32xf32>
    %12 = vector.broadcast %11 : vector<1x32xf32> to vector<16x32xf32>
    %13 = arith.addf %10, %12 : vector<16x32xf32>
    %cst_13 = arith.constant 0.000000e+00 : f32
    %14 = vector.broadcast %cst_13 : f32 to vector<16x32xf32>
    %15 = arith.maximumf %13, %14 : vector<16x32xf32>
    %c0_14 = arith.constant 0 : index
    %c0_15 = arith.constant 0 : index
    %16 = vector.load %arg3[%c0_14, %c0_15] : memref<16x10xbf16, #tpu.memory_space<vmem>>, vector<16x10xbf16>
    %c0_16 = arith.constant 0 : index
    %c0_17 = arith.constant 0 : index
    %17 = vector.load %arg8[%c0_16, %c0_17] : memref<10x32xbf16, #tpu.memory_space<vmem>>, vector<10x32xbf16>
    %cst_18 = arith.constant dense<0.000000e+00> : vector<16x32xf32>
    %18 = tpu.matmul %16, %17, %cst_18 {dimension_numbers = #tpu.dot_dimension_numbers<[1], [0], [0], [1], [0, 0, 1, 1], [], []>} : vector<16x10xbf16>, vector<10x32xbf16>, vector<16x32xf32> -> vector<16x32xf32>
    %c0_19 = arith.constant 0 : index
    %c0_20 = arith.constant 0 : index
    %19 = vector.load %arg9[%c0_19, %c0_20] : memref<1x32xf32, #tpu.memory_space<vmem>>, vector<1x32xf32>
    %20 = vector.broadcast %19 : vector<1x32xf32> to vector<16x32xf32>
    %21 = arith.addf %18, %20 : vector<16x32xf32>
    %cst_21 = arith.constant 0.000000e+00 : f32
    %22 = vector.broadcast %cst_21 : f32 to vector<16x32xf32>
    %23 = arith.maximumf %21, %22 : vector<16x32xf32>
    %24 = arith.truncf %7 : vector<16x32xf32> to vector<16x32xbf16>
    %c0_22 = arith.constant 0 : index
    %c0_23 = arith.constant 0 : index
    %25 = vector.load %arg10[%c0_22, %c0_23] : memref<32x384xbf16, #tpu.memory_space<vmem>>, vector<32x384xbf16>
    %cst_24 = arith.constant dense<0.000000e+00> : vector<16x384xf32>
    %26 = tpu.matmul %24, %25, %cst_24 {dimension_numbers = #tpu.dot_dimension_numbers<[1], [0], [0], [1], [0, 0, 1, 1], [], []>} : vector<16x32xbf16>, vector<32x384xbf16>, vector<16x384xf32> -> vector<16x384xf32>
    %27 = arith.truncf %15 : vector<16x32xf32> to vector<16x32xbf16>
    %c0_25 = arith.constant 0 : index
    %c0_26 = arith.constant 0 : index
    %28 = vector.load %arg11[%c0_25, %c0_26] : memref<32x384xbf16, #tpu.memory_space<vmem>>, vector<32x384xbf16>
    %cst_27 = arith.constant dense<0.000000e+00> : vector<16x384xf32>
    %29 = tpu.matmul %27, %28, %cst_27 {dimension_numbers = #tpu.dot_dimension_numbers<[1], [0], [0], [1], [0, 0, 1, 1], [], []>} : vector<16x32xbf16>, vector<32x384xbf16>, vector<16x384xf32> -> vector<16x384xf32>
    %30 = arith.addf %26, %29 : vector<16x384xf32>
    %31 = arith.truncf %23 : vector<16x32xf32> to vector<16x32xbf16>
    %c0_28 = arith.constant 0 : index
    %c0_29 = arith.constant 0 : index
    %32 = vector.load %arg12[%c0_28, %c0_29] : memref<32x384xbf16, #tpu.memory_space<vmem>>, vector<32x384xbf16>
    %cst_30 = arith.constant dense<0.000000e+00> : vector<16x384xf32>
    %33 = tpu.matmul %31, %32, %cst_30 {dimension_numbers = #tpu.dot_dimension_numbers<[1], [0], [0], [1], [0, 0, 1, 1], [], []>} : vector<16x32xbf16>, vector<32x384xbf16>, vector<16x384xf32> -> vector<16x384xf32>
    %34 = arith.addf %30, %33 : vector<16x384xf32>
    %c0_31 = arith.constant 0 : index
    %c0_32 = arith.constant 0 : index
    %35 = vector.load %arg13[%c0_31, %c0_32] : memref<1x384xf32, #tpu.memory_space<vmem>>, vector<1x384xf32>
    %36 = vector.broadcast %35 : vector<1x384xf32> to vector<16x384xf32>
    %37 = arith.addf %34, %36 : vector<16x384xf32>
    %38 = vector.extract_strided_slice %37 {offsets = [0, 0], sizes = [2, 384], strides = [1, 1]} : vector<16x384xf32> to vector<2x384xf32>
    %c0_33 = arith.constant 0 : index
    %c0_34 = arith.constant 0 : index
    %c0_35 = arith.constant 0 : index
    %39 = vector.load %arg19[%c0_33, %c0_34, %c0_35] : memref<8x2x384xf32, #tpu.memory_space<vmem>>, vector<1x2x384xf32>
    %40 = vector.shape_cast %39 : vector<1x2x384xf32> to vector<2x384xf32>
    %41 = vector.shape_cast %38 : vector<2x384xf32> to vector<1x2x384xf32>
    tpu.vector_store %arg19[%c0_33, %c0_34, %c0_35], %41 {strides = array<i32>} : memref<8x2x384xf32, #tpu.memory_space<vmem>>, vector<1x2x384xf32>,
    %42 = vector.extract_strided_slice %37 {offsets = [2, 0], sizes = [2, 384], strides = [1, 1]} : vector<16x384xf32> to vector<2x384xf32>
    %c1 = arith.constant 1 : index
    %c0_36 = arith.constant 0 : index
    %c0_37 = arith.constant 0 : index
    %43 = vector.load %arg19[%c1, %c0_36, %c0_37] : memref<8x2x384xf32, #tpu.memory_space<vmem>>, vector<1x2x384xf32>
    %44 = vector.shape_cast %43 : vector<1x2x384xf32> to vector<2x384xf32>
    %45 = vector.shape_cast %42 : vector<2x384xf32> to vector<1x2x384xf32>
    tpu.vector_store %arg19[%c1, %c0_36, %c0_37], %45 {strides = array<i32>} : memref<8x2x384xf32, #tpu.memory_space<vmem>>, vector<1x2x384xf32>,
    %46 = vector.extract_strided_slice %37 {offsets = [4, 0], sizes = [2, 384], strides = [1, 1]} : vector<16x384xf32> to vector<2x384xf32>
    %c2 = arith.constant 2 : index
    %c0_38 = arith.constant 0 : index
    %c0_39 = arith.constant 0 : index
    %47 = vector.load %arg19[%c2, %c0_38, %c0_39] : memref<8x2x384xf32, #tpu.memory_space<vmem>>, vector<1x2x384xf32>
    %48 = vector.shape_cast %47 : vector<1x2x384xf32> to vector<2x384xf32>
    %49 = vector.shape_cast %46 : vector<2x384xf32> to vector<1x2x384xf32>
    tpu.vector_store %arg19[%c2, %c0_38, %c0_39], %49 {strides = array<i32>} : memref<8x2x384xf32, #tpu.memory_space<vmem>>, vector<1x2x384xf32>,
    %50 = vector.extract_strided_slice %37 {offsets = [6, 0], sizes = [2, 384], strides = [1, 1]} : vector<16x384xf32> to vector<2x384xf32>
    %c3 = arith.constant 3 : index
    %c0_40 = arith.constant 0 : index
    %c0_41 = arith.constant 0 : index
    %51 = vector.load %arg19[%c3, %c0_40, %c0_41] : memref<8x2x384xf32, #tpu.memory_space<vmem>>, vector<1x2x384xf32>
    %52 = vector.shape_cast %51 : vector<1x2x384xf32> to vector<2x384xf32>
    %53 = vector.shape_cast %50 : vector<2x384xf32> to vector<1x2x384xf32>
    tpu.vector_store %arg19[%c3, %c0_40, %c0_41], %53 {strides = array<i32>} : memref<8x2x384xf32, #tpu.memory_space<vmem>>, vector<1x2x384xf32>,
    %54 = vector.extract_strided_slice %37 {offsets = [8, 0], sizes = [2, 384], strides = [1, 1]} : vector<16x384xf32> to vector<2x384xf32>
    %c4 = arith.constant 4 : index
    %c0_42 = arith.constant 0 : index
    %c0_43 = arith.constant 0 : index
    %55 = vector.load %arg19[%c4, %c0_42, %c0_43] : memref<8x2x384xf32, #tpu.memory_space<vmem>>, vector<1x2x384xf32>
    %56 = vector.shape_cast %55 : vector<1x2x384xf32> to vector<2x384xf32>
    %57 = vector.shape_cast %54 : vector<2x384xf32> to vector<1x2x384xf32>
    tpu.vector_store %arg19[%c4, %c0_42, %c0_43], %57 {strides = array<i32>} : memref<8x2x384xf32, #tpu.memory_space<vmem>>, vector<1x2x384xf32>,
    %58 = vector.extract_strided_slice %37 {offsets = [10, 0], sizes = [2, 384], strides = [1, 1]} : vector<16x384xf32> to vector<2x384xf32>
    %c5 = arith.constant 5 : index
    %c0_44 = arith.constant 0 : index
    %c0_45 = arith.constant 0 : index
    %59 = vector.load %arg19[%c5, %c0_44, %c0_45] : memref<8x2x384xf32, #tpu.memory_space<vmem>>, vector<1x2x384xf32>
    %60 = vector.shape_cast %59 : vector<1x2x384xf32> to vector<2x384xf32>
    %61 = vector.shape_cast %58 : vector<2x384xf32> to vector<1x2x384xf32>
    tpu.vector_store %arg19[%c5, %c0_44, %c0_45], %61 {strides = array<i32>} : memref<8x2x384xf32, #tpu.memory_space<vmem>>, vector<1x2x384xf32>,
    %62 = vector.extract_strided_slice %37 {offsets = [12, 0], sizes = [2, 384], strides = [1, 1]} : vector<16x384xf32> to vector<2x384xf32>
    %c6 = arith.constant 6 : index
    %c0_46 = arith.constant 0 : index
    %c0_47 = arith.constant 0 : index
    %63 = vector.load %arg19[%c6, %c0_46, %c0_47] : memref<8x2x384xf32, #tpu.memory_space<vmem>>, vector<1x2x384xf32>
    %64 = vector.shape_cast %63 : vector<1x2x384xf32> to vector<2x384xf32>
    %65 = vector.shape_cast %62 : vector<2x384xf32> to vector<1x2x384xf32>
    tpu.vector_store %arg19[%c6, %c0_46, %c0_47], %65 {strides = array<i32>} : memref<8x2x384xf32, #tpu.memory_space<vmem>>, vector<1x2x384xf32>,
    %66 = vector.extract_strided_slice %37 {offsets = [14, 0], sizes = [2, 384], strides = [1, 1]} : vector<16x384xf32> to vector<2x384xf32>
    %c7 = arith.constant 7 : index
    %c0_48 = arith.constant 0 : index
    %c0_49 = arith.constant 0 : index
    %67 = vector.load %arg19[%c7, %c0_48, %c0_49] : memref<8x2x384xf32, #tpu.memory_space<vmem>>, vector<1x2x384xf32>
    %68 = vector.shape_cast %67 : vector<1x2x384xf32> to vector<2x384xf32>
    %69 = vector.shape_cast %66 : vector<2x384xf32> to vector<1x2x384xf32>
    tpu.vector_store %arg19[%c7, %c0_48, %c0_49], %69 {strides = array<i32>} : memref<8x2x384xf32, #tpu.memory_space<vmem>>, vector<1x2x384xf32>,
    %c0_i32 = arith.constant 0 : i32
    %70 = arith.cmpi eq, %arg0, %c0_i32 : i32
    %71 = arith.extui %70 : i1 to i32
    %c0_i32_50 = arith.constant 0 : i32
    %72 = arith.cmpi ne, %71, %c0_i32_50 : i32
    scf.if %72 {
      %73 = vector.extract_strided_slice %7 {offsets = [14, 0], sizes = [2, 32], strides = [1, 1]} : vector<16x32xf32> to vector<2x32xf32>
      %74 = vector.extract_strided_slice %15 {offsets = [14, 0], sizes = [2, 32], strides = [1, 1]} : vector<16x32xf32> to vector<2x32xf32>
      %75 = vector.extract_strided_slice %23 {offsets = [14, 0], sizes = [2, 32], strides = [1, 1]} : vector<16x32xf32> to vector<2x32xf32>
      %cst_51 = arith.constant 0.000000e+00 : f32
      %76 = vector.broadcast %cst_51 : f32 to vector<2x32xf32>
      %77 = tpu.concatenate %73, %74, %75, %76 in 1 : vector<2x32xf32>, vector<2x32xf32>, vector<2x32xf32>, vector<2x32xf32> -> vector<2x128xf32>
      %cst_52 = arith.constant 0.000000e+00 : f32
      %78 = vector.broadcast %cst_52 : f32 to vector<2x128xf32>
      %c0_i32_53 = arith.constant 0 : i32
      %79 = arith.index_cast %c0_i32_53 : i32 to index
      %c0_54 = arith.constant 0 : index
      %c0_55 = arith.constant 0 : index
      %80 = vector.load %arg19[%79, %c0_54, %c0_55] : memref<8x2x384xf32, #tpu.memory_space<vmem>>, vector<1x2x384xf32>
      %81 = vector.shape_cast %80 : vector<1x2x384xf32> to vector<2x384xf32>
      %82 = arith.truncf %78 : vector<2x128xf32> to vector<2x128xbf16>
      %c0_56 = arith.constant 0 : index
      %c0_57 = arith.constant 0 : index
      %83 = vector.load %arg14[%c0_56, %c0_57] : memref<128x384xbf16, #tpu.memory_space<vmem>>, vector<128x384xbf16>
      %cst_58 = arith.constant dense<0.000000e+00> : vector<2x384xf32>
      %84 = tpu.matmul %82, %83, %cst_58 {dimension_numbers = #tpu.dot_dimension_numbers<[1], [0], [0], [1], [0, 0, 1, 1], [], []>} : vector<2x128xbf16>, vector<128x384xbf16>, vector<2x384xf32> -> vector<2x384xf32>
      %c0_59 = arith.constant 0 : index
      %c0_60 = arith.constant 0 : index
      %85 = vector.load %arg15[%c0_59, %c0_60] : memref<1x384xf32, #tpu.memory_space<vmem>>, vector<1x384xf32>
      %86 = vector.broadcast %85 : vector<1x384xf32> to vector<2x384xf32>
      %87 = arith.addf %84, %86 : vector<2x384xf32>
      %88 = vector.extract_strided_slice %81 {offsets = [0, 0], sizes = [2, 128], strides = [1, 1]} : vector<2x384xf32> to vector<2x128xf32>
      %89 = vector.extract_strided_slice %87 {offsets = [0, 0], sizes = [2, 128], strides = [1, 1]} : vector<2x384xf32> to vector<2x128xf32>
      %90 = arith.addf %88, %89 : vector<2x128xf32>
      %91 = arith.negf %90 : vector<2x128xf32>
      %92 = math.exp %91 : vector<2x128xf32>
      %cst_61 = arith.constant 1.000000e+00 : f32
      %93 = vector.broadcast %cst_61 : f32 to vector<2x128xf32>
      %94 = arith.addf %93, %92 : vector<2x128xf32>
      %95 = arith.divf %93, %94 : vector<2x128xf32>
      %96 = vector.extract_strided_slice %81 {offsets = [0, 128], sizes = [2, 128], strides = [1, 1]} : vector<2x384xf32> to vector<2x128xf32>
      %97 = vector.extract_strided_slice %87 {offsets = [0, 128], sizes = [2, 128], strides = [1, 1]} : vector<2x384xf32> to vector<2x128xf32>
      %98 = arith.addf %96, %97 : vector<2x128xf32>
      %99 = arith.negf %98 : vector<2x128xf32>
      %100 = math.exp %99 : vector<2x128xf32>
      %cst_62 = arith.constant 1.000000e+00 : f32
      %101 = vector.broadcast %cst_62 : f32 to vector<2x128xf32>
      %102 = arith.addf %101, %100 : vector<2x128xf32>
      %103 = arith.divf %101, %102 : vector<2x128xf32>
      %104 = vector.extract_strided_slice %81 {offsets = [0, 256], sizes = [2, 128], strides = [1, 1]} : vector<2x384xf32> to vector<2x128xf32>
      %105 = vector.extract_strided_slice %87 {offsets = [0, 256], sizes = [2, 128], strides = [1, 1]} : vector<2x384xf32> to vector<2x128xf32>
      %106 = arith.mulf %95, %105 : vector<2x128xf32>
      %107 = arith.addf %104, %106 : vector<2x128xf32>
      %108 = math.tanh %107 : vector<2x128xf32>
      %cst_63 = arith.constant 1.000000e+00 : f32
      %109 = vector.broadcast %cst_63 : f32 to vector<2x128xf32>
      %110 = arith.subf %109, %103 : vector<2x128xf32>
      %111 = arith.mulf %110, %108 : vector<2x128xf32>
      %112 = arith.mulf %103, %78 : vector<2x128xf32>
      %113 = arith.addf %111, %112 : vector<2x128xf32>
      %c1_i32 = arith.constant 1 : i32
      %114 = arith.index_cast %c1_i32 : i32 to index
      %c0_64 = arith.constant 0 : index
      %c0_65 = arith.constant 0 : index
      %115 = vector.load %arg19[%114, %c0_64, %c0_65] : memref<8x2x384xf32, #tpu.memory_space<vmem>>, vector<1x2x384xf32>
      %116 = vector.shape_cast %115 : vector<1x2x384xf32> to vector<2x384xf32>
      %117 = arith.truncf %113 : vector<2x128xf32> to vector<2x128xbf16>
      %c0_66 = arith.constant 0 : index
      %c0_67 = arith.constant 0 : index
      %118 = vector.load %arg14[%c0_66, %c0_67] : memref<128x384xbf16, #tpu.memory_space<vmem>>, vector<128x384xbf16>
      %cst_68 = arith.constant dense<0.000000e+00> : vector<2x384xf32>
      %119 = tpu.matmul %117, %118, %cst_68 {dimension_numbers = #tpu.dot_dimension_numbers<[1], [0], [0], [1], [0, 0, 1, 1], [], []>} : vector<2x128xbf16>, vector<128x384xbf16>, vector<2x384xf32> -> vector<2x384xf32>
      %c0_69 = arith.constant 0 : index
      %c0_70 = arith.constant 0 : index
      %120 = vector.load %arg15[%c0_69, %c0_70] : memref<1x384xf32, #tpu.memory_space<vmem>>, vector<1x384xf32>
      %121 = vector.broadcast %120 : vector<1x384xf32> to vector<2x384xf32>
      %122 = arith.addf %119, %121 : vector<2x384xf32>
      %123 = vector.extract_strided_slice %116 {offsets = [0, 0], sizes = [2, 128], strides = [1, 1]} : vector<2x384xf32> to vector<2x128xf32>
      %124 = vector.extract_strided_slice %122 {offsets = [0, 0], sizes = [2, 128], strides = [1, 1]} : vector<2x384xf32> to vector<2x128xf32>
      %125 = arith.addf %123, %124 : vector<2x128xf32>
      %126 = arith.negf %125 : vector<2x128xf32>
      %127 = math.exp %126 : vector<2x128xf32>
      %cst_71 = arith.constant 1.000000e+00 : f32
      %128 = vector.broadcast %cst_71 : f32 to vector<2x128xf32>
      %129 = arith.addf %128, %127 : vector<2x128xf32>
      %130 = arith.divf %128, %129 : vector<2x128xf32>
      %131 = vector.extract_strided_slice %116 {offsets = [0, 128], sizes = [2, 128], strides = [1, 1]} : vector<2x384xf32> to vector<2x128xf32>
      %132 = vector.extract_strided_slice %122 {offsets = [0, 128], sizes = [2, 128], strides = [1, 1]} : vector<2x384xf32> to vector<2x128xf32>
      %133 = arith.addf %131, %132 : vector<2x128xf32>
      %134 = arith.negf %133 : vector<2x128xf32>
      %135 = math.exp %134 : vector<2x128xf32>
      %cst_72 = arith.constant 1.000000e+00 : f32
      %136 = vector.broadcast %cst_72 : f32 to vector<2x128xf32>
      %137 = arith.addf %136, %135 : vector<2x128xf32>
      %138 = arith.divf %136, %137 : vector<2x128xf32>
      %139 = vector.extract_strided_slice %116 {offsets = [0, 256], sizes = [2, 128], strides = [1, 1]} : vector<2x384xf32> to vector<2x128xf32>
      %140 = vector.extract_strided_slice %122 {offsets = [0, 256], sizes = [2, 128], strides = [1, 1]} : vector<2x384xf32> to vector<2x128xf32>
      %141 = arith.mulf %130, %140 : vector<2x128xf32>
      %142 = arith.addf %139, %141 : vector<2x128xf32>
      %143 = math.tanh %142 : vector<2x128xf32>
      %cst_73 = arith.constant 1.000000e+00 : f32
      %144 = vector.broadcast %cst_73 : f32 to vector<2x128xf32>
      %145 = arith.subf %144, %138 : vector<2x128xf32>
      %146 = arith.mulf %145, %143 : vector<2x128xf32>
      %147 = arith.mulf %138, %113 : vector<2x128xf32>
      %148 = arith.addf %146, %147 : vector<2x128xf32>
      %c2_i32 = arith.constant 2 : i32
      %149 = arith.index_cast %c2_i32 : i32 to index
      %c0_74 = arith.constant 0 : index
      %c0_75 = arith.constant 0 : index
      %150 = vector.load %arg19[%149, %c0_74, %c0_75] : memref<8x2x384xf32, #tpu.memory_space<vmem>>, vector<1x2x384xf32>
      %151 = vector.shape_cast %150 : vector<1x2x384xf32> to vector<2x384xf32>
      %152 = arith.truncf %148 : vector<2x128xf32> to vector<2x128xbf16>
      %c0_76 = arith.constant 0 : index
      %c0_77 = arith.constant 0 : index
      %153 = vector.load %arg14[%c0_76, %c0_77] : memref<128x384xbf16, #tpu.memory_space<vmem>>, vector<128x384xbf16>
      %cst_78 = arith.constant dense<0.000000e+00> : vector<2x384xf32>
      %154 = tpu.matmul %152, %153, %cst_78 {dimension_numbers = #tpu.dot_dimension_numbers<[1], [0], [0], [1], [0, 0, 1, 1], [], []>} : vector<2x128xbf16>, vector<128x384xbf16>, vector<2x384xf32> -> vector<2x384xf32>
      %c0_79 = arith.constant 0 : index
      %c0_80 = arith.constant 0 : index
      %155 = vector.load %arg15[%c0_79, %c0_80] : memref<1x384xf32, #tpu.memory_space<vmem>>, vector<1x384xf32>
      %156 = vector.broadcast %155 : vector<1x384xf32> to vector<2x384xf32>
      %157 = arith.addf %154, %156 : vector<2x384xf32>
      %158 = vector.extract_strided_slice %151 {offsets = [0, 0], sizes = [2, 128], strides = [1, 1]} : vector<2x384xf32> to vector<2x128xf32>
      %159 = vector.extract_strided_slice %157 {offsets = [0, 0], sizes = [2, 128], strides = [1, 1]} : vector<2x384xf32> to vector<2x128xf32>
      %160 = arith.addf %158, %159 : vector<2x128xf32>
      %161 = arith.negf %160 : vector<2x128xf32>
      %162 = math.exp %161 : vector<2x128xf32>
      %cst_81 = arith.constant 1.000000e+00 : f32
      %163 = vector.broadcast %cst_81 : f32 to vector<2x128xf32>
      %164 = arith.addf %163, %162 : vector<2x128xf32>
      %165 = arith.divf %163, %164 : vector<2x128xf32>
      %166 = vector.extract_strided_slice %151 {offsets = [0, 128], sizes = [2, 128], strides = [1, 1]} : vector<2x384xf32> to vector<2x128xf32>
      %167 = vector.extract_strided_slice %157 {offsets = [0, 128], sizes = [2, 128], strides = [1, 1]} : vector<2x384xf32> to vector<2x128xf32>
      %168 = arith.addf %166, %167 : vector<2x128xf32>
      %169 = arith.negf %168 : vector<2x128xf32>
      %170 = math.exp %169 : vector<2x128xf32>
      %cst_82 = arith.constant 1.000000e+00 : f32
      %171 = vector.broadcast %cst_82 : f32 to vector<2x128xf32>
      %172 = arith.addf %171, %170 : vector<2x128xf32>
      %173 = arith.divf %171, %172 : vector<2x128xf32>
      %174 = vector.extract_strided_slice %151 {offsets = [0, 256], sizes = [2, 128], strides = [1, 1]} : vector<2x384xf32> to vector<2x128xf32>
      %175 = vector.extract_strided_slice %157 {offsets = [0, 256], sizes = [2, 128], strides = [1, 1]} : vector<2x384xf32> to vector<2x128xf32>
      %176 = arith.mulf %165, %175 : vector<2x128xf32>
      %177 = arith.addf %174, %176 : vector<2x128xf32>
      %178 = math.tanh %177 : vector<2x128xf32>
      %cst_83 = arith.constant 1.000000e+00 : f32
      %179 = vector.broadcast %cst_83 : f32 to vector<2x128xf32>
      %180 = arith.subf %179, %173 : vector<2x128xf32>
      %181 = arith.mulf %180, %178 : vector<2x128xf32>
      %182 = arith.mulf %173, %148 : vector<2x128xf32>
      %183 = arith.addf %181, %182 : vector<2x128xf32>
      %c3_i32 = arith.constant 3 : i32
      %184 = arith.index_cast %c3_i32 : i32 to index
      %c0_84 = arith.constant 0 : index
      %c0_85 = arith.constant 0 : index
      %185 = vector.load %arg19[%184, %c0_84, %c0_85] : memref<8x2x384xf32, #tpu.memory_space<vmem>>, vector<1x2x384xf32>
      %186 = vector.shape_cast %185 : vector<1x2x384xf32> to vector<2x384xf32>
      %187 = arith.truncf %183 : vector<2x128xf32> to vector<2x128xbf16>
      %c0_86 = arith.constant 0 : index
      %c0_87 = arith.constant 0 : index
      %188 = vector.load %arg14[%c0_86, %c0_87] : memref<128x384xbf16, #tpu.memory_space<vmem>>, vector<128x384xbf16>
      %cst_88 = arith.constant dense<0.000000e+00> : vector<2x384xf32>
      %189 = tpu.matmul %187, %188, %cst_88 {dimension_numbers = #tpu.dot_dimension_numbers<[1], [0], [0], [1], [0, 0, 1, 1], [], []>} : vector<2x128xbf16>, vector<128x384xbf16>, vector<2x384xf32> -> vector<2x384xf32>
      %c0_89 = arith.constant 0 : index
      %c0_90 = arith.constant 0 : index
      %190 = vector.load %arg15[%c0_89, %c0_90] : memref<1x384xf32, #tpu.memory_space<vmem>>, vector<1x384xf32>
      %191 = vector.broadcast %190 : vector<1x384xf32> to vector<2x384xf32>
      %192 = arith.addf %189, %191 : vector<2x384xf32>
      %193 = vector.extract_strided_slice %186 {offsets = [0, 0], sizes = [2, 128], strides = [1, 1]} : vector<2x384xf32> to vector<2x128xf32>
      %194 = vector.extract_strided_slice %192 {offsets = [0, 0], sizes = [2, 128], strides = [1, 1]} : vector<2x384xf32> to vector<2x128xf32>
      %195 = arith.addf %193, %194 : vector<2x128xf32>
      %196 = arith.negf %195 : vector<2x128xf32>
      %197 = math.exp %196 : vector<2x128xf32>
      %cst_91 = arith.constant 1.000000e+00 : f32
      %198 = vector.broadcast %cst_91 : f32 to vector<2x128xf32>
      %199 = arith.addf %198, %197 : vector<2x128xf32>
      %200 = arith.divf %198, %199 : vector<2x128xf32>
      %201 = vector.extract_strided_slice %186 {offsets = [0, 128], sizes = [2, 128], strides = [1, 1]} : vector<2x384xf32> to vector<2x128xf32>
      %202 = vector.extract_strided_slice %192 {offsets = [0, 128], sizes = [2, 128], strides = [1, 1]} : vector<2x384xf32> to vector<2x128xf32>
      %203 = arith.addf %201, %202 : vector<2x128xf32>
      %204 = arith.negf %203 : vector<2x128xf32>
      %205 = math.exp %204 : vector<2x128xf32>
      %cst_92 = arith.constant 1.000000e+00 : f32
      %206 = vector.broadcast %cst_92 : f32 to vector<2x128xf32>
      %207 = arith.addf %206, %205 : vector<2x128xf32>
      %208 = arith.divf %206, %207 : vector<2x128xf32>
      %209 = vector.extract_strided_slice %186 {offsets = [0, 256], sizes = [2, 128], strides = [1, 1]} : vector<2x384xf32> to vector<2x128xf32>
      %210 = vector.extract_strided_slice %192 {offsets = [0, 256], sizes = [2, 128], strides = [1, 1]} : vector<2x384xf32> to vector<2x128xf32>
      %211 = arith.mulf %200, %210 : vector<2x128xf32>
      %212 = arith.addf %209, %211 : vector<2x128xf32>
      %213 = math.tanh %212 : vector<2x128xf32>
      %cst_93 = arith.constant 1.000000e+00 : f32
      %214 = vector.broadcast %cst_93 : f32 to vector<2x128xf32>
      %215 = arith.subf %214, %208 : vector<2x128xf32>
      %216 = arith.mulf %215, %213 : vector<2x128xf32>
      %217 = arith.mulf %208, %183 : vector<2x128xf32>
      %218 = arith.addf %216, %217 : vector<2x128xf32>
      %c4_i32 = arith.constant 4 : i32
      %219 = arith.index_cast %c4_i32 : i32 to index
      %c0_94 = arith.constant 0 : index
      %c0_95 = arith.constant 0 : index
      %220 = vector.load %arg19[%219, %c0_94, %c0_95] : memref<8x2x384xf32, #tpu.memory_space<vmem>>, vector<1x2x384xf32>
      %221 = vector.shape_cast %220 : vector<1x2x384xf32> to vector<2x384xf32>
      %222 = arith.truncf %218 : vector<2x128xf32> to vector<2x128xbf16>
      %c0_96 = arith.constant 0 : index
      %c0_97 = arith.constant 0 : index
      %223 = vector.load %arg14[%c0_96, %c0_97] : memref<128x384xbf16, #tpu.memory_space<vmem>>, vector<128x384xbf16>
      %cst_98 = arith.constant dense<0.000000e+00> : vector<2x384xf32>
      %224 = tpu.matmul %222, %223, %cst_98 {dimension_numbers = #tpu.dot_dimension_numbers<[1], [0], [0], [1], [0, 0, 1, 1], [], []>} : vector<2x128xbf16>, vector<128x384xbf16>, vector<2x384xf32> -> vector<2x384xf32>
      %c0_99 = arith.constant 0 : index
      %c0_100 = arith.constant 0 : index
      %225 = vector.load %arg15[%c0_99, %c0_100] : memref<1x384xf32, #tpu.memory_space<vmem>>, vector<1x384xf32>
      %226 = vector.broadcast %225 : vector<1x384xf32> to vector<2x384xf32>
      %227 = arith.addf %224, %226 : vector<2x384xf32>
      %228 = vector.extract_strided_slice %221 {offsets = [0, 0], sizes = [2, 128], strides = [1, 1]} : vector<2x384xf32> to vector<2x128xf32>
      %229 = vector.extract_strided_slice %227 {offsets = [0, 0], sizes = [2, 128], strides = [1, 1]} : vector<2x384xf32> to vector<2x128xf32>
      %230 = arith.addf %228, %229 : vector<2x128xf32>
      %231 = arith.negf %230 : vector<2x128xf32>
      %232 = math.exp %231 : vector<2x128xf32>
      %cst_101 = arith.constant 1.000000e+00 : f32
      %233 = vector.broadcast %cst_101 : f32 to vector<2x128xf32>
      %234 = arith.addf %233, %232 : vector<2x128xf32>
      %235 = arith.divf %233, %234 : vector<2x128xf32>
      %236 = vector.extract_strided_slice %221 {offsets = [0, 128], sizes = [2, 128], strides = [1, 1]} : vector<2x384xf32> to vector<2x128xf32>
      %237 = vector.extract_strided_slice %227 {offsets = [0, 128], sizes = [2, 128], strides = [1, 1]} : vector<2x384xf32> to vector<2x128xf32>
      %238 = arith.addf %236, %237 : vector<2x128xf32>
      %239 = arith.negf %238 : vector<2x128xf32>
      %240 = math.exp %239 : vector<2x128xf32>
      %cst_102 = arith.constant 1.000000e+00 : f32
      %241 = vector.broadcast %cst_102 : f32 to vector<2x128xf32>
      %242 = arith.addf %241, %240 : vector<2x128xf32>
      %243 = arith.divf %241, %242 : vector<2x128xf32>
      %244 = vector.extract_strided_slice %221 {offsets = [0, 256], sizes = [2, 128], strides = [1, 1]} : vector<2x384xf32> to vector<2x128xf32>
      %245 = vector.extract_strided_slice %227 {offsets = [0, 256], sizes = [2, 128], strides = [1, 1]} : vector<2x384xf32> to vector<2x128xf32>
      %246 = arith.mulf %235, %245 : vector<2x128xf32>
      %247 = arith.addf %244, %246 : vector<2x128xf32>
      %248 = math.tanh %247 : vector<2x128xf32>
      %cst_103 = arith.constant 1.000000e+00 : f32
      %249 = vector.broadcast %cst_103 : f32 to vector<2x128xf32>
      %250 = arith.subf %249, %243 : vector<2x128xf32>
      %251 = arith.mulf %250, %248 : vector<2x128xf32>
      %252 = arith.mulf %243, %218 : vector<2x128xf32>
      %253 = arith.addf %251, %252 : vector<2x128xf32>
      %c5_i32 = arith.constant 5 : i32
      %254 = arith.index_cast %c5_i32 : i32 to index
      %c0_104 = arith.constant 0 : index
      %c0_105 = arith.constant 0 : index
      %255 = vector.load %arg19[%254, %c0_104, %c0_105] : memref<8x2x384xf32, #tpu.memory_space<vmem>>, vector<1x2x384xf32>
      %256 = vector.shape_cast %255 : vector<1x2x384xf32> to vector<2x384xf32>
      %257 = arith.truncf %253 : vector<2x128xf32> to vector<2x128xbf16>
      %c0_106 = arith.constant 0 : index
      %c0_107 = arith.constant 0 : index
      %258 = vector.load %arg14[%c0_106, %c0_107] : memref<128x384xbf16, #tpu.memory_space<vmem>>, vector<128x384xbf16>
      %cst_108 = arith.constant dense<0.000000e+00> : vector<2x384xf32>
      %259 = tpu.matmul %257, %258, %cst_108 {dimension_numbers = #tpu.dot_dimension_numbers<[1], [0], [0], [1], [0, 0, 1, 1], [], []>} : vector<2x128xbf16>, vector<128x384xbf16>, vector<2x384xf32> -> vector<2x384xf32>
      %c0_109 = arith.constant 0 : index
      %c0_110 = arith.constant 0 : index
      %260 = vector.load %arg15[%c0_109, %c0_110] : memref<1x384xf32, #tpu.memory_space<vmem>>, vector<1x384xf32>
      %261 = vector.broadcast %260 : vector<1x384xf32> to vector<2x384xf32>
      %262 = arith.addf %259, %261 : vector<2x384xf32>
      %263 = vector.extract_strided_slice %256 {offsets = [0, 0], sizes = [2, 128], strides = [1, 1]} : vector<2x384xf32> to vector<2x128xf32>
      %264 = vector.extract_strided_slice %262 {offsets = [0, 0], sizes = [2, 128], strides = [1, 1]} : vector<2x384xf32> to vector<2x128xf32>
      %265 = arith.addf %263, %264 : vector<2x128xf32>
      %266 = arith.negf %265 : vector<2x128xf32>
      %267 = math.exp %266 : vector<2x128xf32>
      %cst_111 = arith.constant 1.000000e+00 : f32
      %268 = vector.broadcast %cst_111 : f32 to vector<2x128xf32>
      %269 = arith.addf %268, %267 : vector<2x128xf32>
      %270 = arith.divf %268, %269 : vector<2x128xf32>
      %271 = vector.extract_strided_slice %256 {offsets = [0, 128], sizes = [2, 128], strides = [1, 1]} : vector<2x384xf32> to vector<2x128xf32>
      %272 = vector.extract_strided_slice %262 {offsets = [0, 128], sizes = [2, 128], strides = [1, 1]} : vector<2x384xf32> to vector<2x128xf32>
      %273 = arith.addf %271, %272 : vector<2x128xf32>
      %274 = arith.negf %273 : vector<2x128xf32>
      %275 = math.exp %274 : vector<2x128xf32>
      %cst_112 = arith.constant 1.000000e+00 : f32
      %276 = vector.broadcast %cst_112 : f32 to vector<2x128xf32>
      %277 = arith.addf %276, %275 : vector<2x128xf32>
      %278 = arith.divf %276, %277 : vector<2x128xf32>
      %279 = vector.extract_strided_slice %256 {offsets = [0, 256], sizes = [2, 128], strides = [1, 1]} : vector<2x384xf32> to vector<2x128xf32>
      %280 = vector.extract_strided_slice %262 {offsets = [0, 256], sizes = [2, 128], strides = [1, 1]} : vector<2x384xf32> to vector<2x128xf32>
      %281 = arith.mulf %270, %280 : vector<2x128xf32>
      %282 = arith.addf %279, %281 : vector<2x128xf32>
      %283 = math.tanh %282 : vector<2x128xf32>
      %cst_113 = arith.constant 1.000000e+00 : f32
      %284 = vector.broadcast %cst_113 : f32 to vector<2x128xf32>
      %285 = arith.subf %284, %278 : vector<2x128xf32>
      %286 = arith.mulf %285, %283 : vector<2x128xf32>
      %287 = arith.mulf %278, %253 : vector<2x128xf32>
      %288 = arith.addf %286, %287 : vector<2x128xf32>
      %c6_i32 = arith.constant 6 : i32
      %289 = arith.index_cast %c6_i32 : i32 to index
      %c0_114 = arith.constant 0 : index
      %c0_115 = arith.constant 0 : index
      %290 = vector.load %arg19[%289, %c0_114, %c0_115] : memref<8x2x384xf32, #tpu.memory_space<vmem>>, vector<1x2x384xf32>
      %291 = vector.shape_cast %290 : vector<1x2x384xf32> to vector<2x384xf32>
      %292 = arith.truncf %288 : vector<2x128xf32> to vector<2x128xbf16>
      %c0_116 = arith.constant 0 : index
      %c0_117 = arith.constant 0 : index
      %293 = vector.load %arg14[%c0_116, %c0_117] : memref<128x384xbf16, #tpu.memory_space<vmem>>, vector<128x384xbf16>
      %cst_118 = arith.constant dense<0.000000e+00> : vector<2x384xf32>
      %294 = tpu.matmul %292, %293, %cst_118 {dimension_numbers = #tpu.dot_dimension_numbers<[1], [0], [0], [1], [0, 0, 1, 1], [], []>} : vector<2x128xbf16>, vector<128x384xbf16>, vector<2x384xf32> -> vector<2x384xf32>
      %c0_119 = arith.constant 0 : index
      %c0_120 = arith.constant 0 : index
      %295 = vector.load %arg15[%c0_119, %c0_120] : memref<1x384xf32, #tpu.memory_space<vmem>>, vector<1x384xf32>
      %296 = vector.broadcast %295 : vector<1x384xf32> to vector<2x384xf32>
      %297 = arith.addf %294, %296 : vector<2x384xf32>
      %298 = vector.extract_strided_slice %291 {offsets = [0, 0], sizes = [2, 128], strides = [1, 1]} : vector<2x384xf32> to vector<2x128xf32>
      %299 = vector.extract_strided_slice %297 {offsets = [0, 0], sizes = [2, 128], strides = [1, 1]} : vector<2x384xf32> to vector<2x128xf32>
      %300 = arith.addf %298, %299 : vector<2x128xf32>
      %301 = arith.negf %300 : vector<2x128xf32>
      %302 = math.exp %301 : vector<2x128xf32>
      %cst_121 = arith.constant 1.000000e+00 : f32
      %303 = vector.broadcast %cst_121 : f32 to vector<2x128xf32>
      %304 = arith.addf %303, %302 : vector<2x128xf32>
      %305 = arith.divf %303, %304 : vector<2x128xf32>
      %306 = vector.extract_strided_slice %291 {offsets = [0, 128], sizes = [2, 128], strides = [1, 1]} : vector<2x384xf32> to vector<2x128xf32>
      %307 = vector.extract_strided_slice %297 {offsets = [0, 128], sizes = [2, 128], strides = [1, 1]} : vector<2x384xf32> to vector<2x128xf32>
      %308 = arith.addf %306, %307 : vector<2x128xf32>
      %309 = arith.negf %308 : vector<2x128xf32>
      %310 = math.exp %309 : vector<2x128xf32>
      %cst_122 = arith.constant 1.000000e+00 : f32
      %311 = vector.broadcast %cst_122 : f32 to vector<2x128xf32>
      %312 = arith.addf %311, %310 : vector<2x128xf32>
      %313 = arith.divf %311, %312 : vector<2x128xf32>
      %314 = vector.extract_strided_slice %291 {offsets = [0, 256], sizes = [2, 128], strides = [1, 1]} : vector<2x384xf32> to vector<2x128xf32>
      %315 = vector.extract_strided_slice %297 {offsets = [0, 256], sizes = [2, 128], strides = [1, 1]} : vector<2x384xf32> to vector<2x128xf32>
      %316 = arith.mulf %305, %315 : vector<2x128xf32>
      %317 = arith.addf %314, %316 : vector<2x128xf32>
      %318 = math.tanh %317 : vector<2x128xf32>
      %cst_123 = arith.constant 1.000000e+00 : f32
      %319 = vector.broadcast %cst_123 : f32 to vector<2x128xf32>
      %320 = arith.subf %319, %313 : vector<2x128xf32>
      %321 = arith.mulf %320, %318 : vector<2x128xf32>
      %322 = arith.mulf %313, %288 : vector<2x128xf32>
      %323 = arith.addf %321, %322 : vector<2x128xf32>
      %c7_i32 = arith.constant 7 : i32
      %324 = arith.index_cast %c7_i32 : i32 to index
      %c0_124 = arith.constant 0 : index
      %c0_125 = arith.constant 0 : index
      %325 = vector.load %arg19[%324, %c0_124, %c0_125] : memref<8x2x384xf32, #tpu.memory_space<vmem>>, vector<1x2x384xf32>
      %326 = vector.shape_cast %325 : vector<1x2x384xf32> to vector<2x384xf32>
      %327 = arith.truncf %323 : vector<2x128xf32> to vector<2x128xbf16>
      %c0_126 = arith.constant 0 : index
      %c0_127 = arith.constant 0 : index
      %328 = vector.load %arg14[%c0_126, %c0_127] : memref<128x384xbf16, #tpu.memory_space<vmem>>, vector<128x384xbf16>
      %cst_128 = arith.constant dense<0.000000e+00> : vector<2x384xf32>
      %329 = tpu.matmul %327, %328, %cst_128 {dimension_numbers = #tpu.dot_dimension_numbers<[1], [0], [0], [1], [0, 0, 1, 1], [], []>} : vector<2x128xbf16>, vector<128x384xbf16>, vector<2x384xf32> -> vector<2x384xf32>
      %c0_129 = arith.constant 0 : index
      %c0_130 = arith.constant 0 : index
      %330 = vector.load %arg15[%c0_129, %c0_130] : memref<1x384xf32, #tpu.memory_space<vmem>>, vector<1x384xf32>
      %331 = vector.broadcast %330 : vector<1x384xf32> to vector<2x384xf32>
      %332 = arith.addf %329, %331 : vector<2x384xf32>
      %333 = vector.extract_strided_slice %326 {offsets = [0, 0], sizes = [2, 128], strides = [1, 1]} : vector<2x384xf32> to vector<2x128xf32>
      %334 = vector.extract_strided_slice %332 {offsets = [0, 0], sizes = [2, 128], strides = [1, 1]} : vector<2x384xf32> to vector<2x128xf32>
      %335 = arith.addf %333, %334 : vector<2x128xf32>
      %336 = arith.negf %335 : vector<2x128xf32>
      %337 = math.exp %336 : vector<2x128xf32>
      %cst_131 = arith.constant 1.000000e+00 : f32
      %338 = vector.broadcast %cst_131 : f32 to vector<2x128xf32>
      %339 = arith.addf %338, %337 : vector<2x128xf32>
      %340 = arith.divf %338, %339 : vector<2x128xf32>
      %341 = vector.extract_strided_slice %326 {offsets = [0, 128], sizes = [2, 128], strides = [1, 1]} : vector<2x384xf32> to vector<2x128xf32>
      %342 = vector.extract_strided_slice %332 {offsets = [0, 128], sizes = [2, 128], strides = [1, 1]} : vector<2x384xf32> to vector<2x128xf32>
      %343 = arith.addf %341, %342 : vector<2x128xf32>
      %344 = arith.negf %343 : vector<2x128xf32>
      %345 = math.exp %344 : vector<2x128xf32>
      %cst_132 = arith.constant 1.000000e+00 : f32
      %346 = vector.broadcast %cst_132 : f32 to vector<2x128xf32>
      %347 = arith.addf %346, %345 : vector<2x128xf32>
      %348 = arith.divf %346, %347 : vector<2x128xf32>
      %349 = vector.extract_strided_slice %326 {offsets = [0, 256], sizes = [2, 128], strides = [1, 1]} : vector<2x384xf32> to vector<2x128xf32>
      %350 = vector.extract_strided_slice %332 {offsets = [0, 256], sizes = [2, 128], strides = [1, 1]} : vector<2x384xf32> to vector<2x128xf32>
      %351 = arith.mulf %340, %350 : vector<2x128xf32>
      %352 = arith.addf %349, %351 : vector<2x128xf32>
      %353 = math.tanh %352 : vector<2x128xf32>
      %cst_133 = arith.constant 1.000000e+00 : f32
      %354 = vector.broadcast %cst_133 : f32 to vector<2x128xf32>
      %355 = arith.subf %354, %348 : vector<2x128xf32>
      %356 = arith.mulf %355, %353 : vector<2x128xf32>
      %357 = arith.mulf %348, %323 : vector<2x128xf32>
      %358 = arith.addf %356, %357 : vector<2x128xf32>
      %c8_i32 = arith.constant 8 : i32
      %359 = arith.addf %358, %77 : vector<2x128xf32>
      %cst_134 = arith.constant 0.000000e+00 : f32
      %360 = vector.broadcast %cst_134 : f32 to vector<2x128xf32>
      %361 = arith.maximumf %359, %360 : vector<2x128xf32>
      %362 = arith.truncf %361 : vector<2x128xf32> to vector<2x128xbf16>
      %c0_135 = arith.constant 0 : index
      %c0_136 = arith.constant 0 : index
      %363 = vector.load %arg16[%c0_135, %c0_136] : memref<128x8xbf16, #tpu.memory_space<vmem>>, vector<128x8xbf16>
      %cst_137 = arith.constant dense<0.000000e+00> : vector<2x8xf32>
      %364 = tpu.matmul %362, %363, %cst_137 {dimension_numbers = #tpu.dot_dimension_numbers<[1], [0], [0], [1], [0, 0, 1, 1], [], []>} : vector<2x128xbf16>, vector<128x8xbf16>, vector<2x8xf32> -> vector<2x8xf32>
      %c0_138 = arith.constant 0 : index
      %c0_139 = arith.constant 0 : index
      %365 = vector.load %arg17[%c0_138, %c0_139] : memref<1x8xf32, #tpu.memory_space<vmem>>, vector<1x8xf32>
      %366 = vector.broadcast %365 : vector<1x8xf32> to vector<2x8xf32>
      %367 = arith.addf %364, %366 : vector<2x8xf32>
      %c0_140 = arith.constant 0 : index
      %c0_141 = arith.constant 0 : index
      %368 = vector.load %arg18[%c0_140, %c0_141] : memref<2x8xf32, #tpu.memory_space<vmem>>, vector<2x8xf32>
      tpu.vector_store %arg18[%c0_140, %c0_141], %367 {strides = array<i32>} : memref<2x8xf32, #tpu.memory_space<vmem>>, vector<2x8xf32>,
    } else {
    }
    return
  }
  func.func @transform_0(%arg0: i32) -> (i32, i32) {
    %c0_i32 = arith.constant 0 : i32
    %c0_i32_0 = arith.constant 0 : i32
    return %arg0, %c0_i32 : i32, i32
  }
  func.func @transform_1(%arg0: i32) -> (i32, i32) {
    %c0_i32 = arith.constant 0 : i32
    %c0_i32_0 = arith.constant 0 : i32
    return %arg0, %c0_i32 : i32, i32
  }
  func.func @transform_2(%arg0: i32) -> (i32, i32) {
    %c0_i32 = arith.constant 0 : i32
    %c0_i32_0 = arith.constant 0 : i32
    return %arg0, %c0_i32 : i32, i32
  }
  func.func @transform_3(%arg0: i32) -> (i32, i32) {
    %c0_i32 = arith.constant 0 : i32
    %c0_i32_0 = arith.constant 0 : i32
    %c0_i32_1 = arith.constant 0 : i32
    return %c0_i32, %c0_i32_0 : i32, i32
  }
  func.func @transform_4(%arg0: i32) -> (i32, i32) {
    %c0_i32 = arith.constant 0 : i32
    %c0_i32_0 = arith.constant 0 : i32
    %c0_i32_1 = arith.constant 0 : i32
    return %c0_i32, %c0_i32_0 : i32, i32
  }
  func.func @transform_5(%arg0: i32) -> (i32, i32) {
    %c0_i32 = arith.constant 0 : i32
    %c0_i32_0 = arith.constant 0 : i32
    %c0_i32_1 = arith.constant 0 : i32
    return %c0_i32, %c0_i32_0 : i32, i32
  }
  func.func @transform_6(%arg0: i32) -> (i32, i32) {
    %c0_i32 = arith.constant 0 : i32
    %c0_i32_0 = arith.constant 0 : i32
    %c0_i32_1 = arith.constant 0 : i32
    return %c0_i32, %c0_i32_0 : i32, i32
  }
  func.func @transform_7(%arg0: i32) -> (i32, i32) {
    %c0_i32 = arith.constant 0 : i32
    %c0_i32_0 = arith.constant 0 : i32
    %c0_i32_1 = arith.constant 0 : i32
    return %c0_i32, %c0_i32_0 : i32, i32
  }
  func.func @transform_8(%arg0: i32) -> (i32, i32) {
    %c0_i32 = arith.constant 0 : i32
    %c0_i32_0 = arith.constant 0 : i32
    %c0_i32_1 = arith.constant 0 : i32
    return %c0_i32, %c0_i32_0 : i32, i32
  }
  func.func @transform_9(%arg0: i32) -> (i32, i32) {
    %c0_i32 = arith.constant 0 : i32
    %c0_i32_0 = arith.constant 0 : i32
    %c0_i32_1 = arith.constant 0 : i32
    return %c0_i32, %c0_i32_0 : i32, i32
  }
  func.func @transform_10(%arg0: i32) -> (i32, i32) {
    %c0_i32 = arith.constant 0 : i32
    %c0_i32_0 = arith.constant 0 : i32
    %c0_i32_1 = arith.constant 0 : i32
    return %c0_i32, %c0_i32_0 : i32, i32
  }
  func.func @transform_11(%arg0: i32) -> (i32, i32) {
    %c0_i32 = arith.constant 0 : i32
    %c0_i32_0 = arith.constant 0 : i32
    %c0_i32_1 = arith.constant 0 : i32
    return %c0_i32, %c0_i32_0 : i32, i32
  }
  func.func @transform_12(%arg0: i32) -> (i32, i32) {
    %c0_i32 = arith.constant 0 : i32
    %c0_i32_0 = arith.constant 0 : i32
    %c0_i32_1 = arith.constant 0 : i32
    return %c0_i32, %c0_i32_0 : i32, i32
  }
  func.func @transform_13(%arg0: i32) -> (i32, i32) {
    %c0_i32 = arith.constant 0 : i32
    %c0_i32_0 = arith.constant 0 : i32
    %c0_i32_1 = arith.constant 0 : i32
    return %c0_i32, %c0_i32_0 : i32, i32
  }
  func.func @transform_14(%arg0: i32) -> (i32, i32) {
    %c0_i32 = arith.constant 0 : i32
    %c0_i32_0 = arith.constant 0 : i32
    %c0_i32_1 = arith.constant 0 : i32
    return %c0_i32, %c0_i32_0 : i32, i32
  }
  func.func @transform_15(%arg0: i32) -> (i32, i32) {
    %c0_i32 = arith.constant 0 : i32
    %c0_i32_0 = arith.constant 0 : i32
    %c0_i32_1 = arith.constant 0 : i32
    return %c0_i32, %c0_i32_0 : i32, i32
  }
  func.func @transform_16(%arg0: i32) -> (i32, i32) {
    %c0_i32 = arith.constant 0 : i32
    %c0_i32_0 = arith.constant 0 : i32
    %c0_i32_1 = arith.constant 0 : i32
    return %c0_i32, %c0_i32_0 : i32, i32
  }
  func.func @transform_17(%arg0: i32) -> (i32, i32) {
    %c0_i32 = arith.constant 0 : i32
    %c0_i32_0 = arith.constant 0 : i32
    %c0_i32_1 = arith.constant 0 : i32
    return %c0_i32, %c0_i32_0 : i32, i32
  }
}

</mosaic_0001>

<bundles_post_ra>
// kernel: tpu_custom_call.1
= control target key start
LH: loop header
LB: loop body
LE: loop exit
PB: predicated region body
PF: predicated region fallthrough
CT: control target
= control target key end

     0   :  { %s5608_s0 = inlined_call_operand.vmem [shape: bf16[16,1024], index: 0, kind: input, shape index: {}]   ;;  %s5609_s1 = inlined_call_operand.vmem [shape: bf16[16,1024], index: 1, kind: input, shape index: {}]   ;;  %s5610_s2 = inlined_call_operand.vmem [shape: bf16[16,10], index: 2, kind: input, shape index: {}]   ;;  %s5611_s3 = inlined_call_operand.vmem [shape: bf16[1024,32], index: 3, kind: input, shape index: {}]   ;;  %s5612_s4 = inlined_call_operand.vmem [shape: f32[1,32], index: 4, kind: input, shape index: {}]   ;;  %s5613_s5 = inlined_call_operand.vmem [shape: bf16[1024,32], index: 5, kind: input, shape index: {}]   ;;  %s5614_s6 = inlined_call_operand.vmem [shape: f32[1,32], index: 6, kind: input, shape index: {}]   ;;  %s5615_s7 = inlined_call_operand.vmem [shape: bf16[10,32], index: 7, kind: input, shape index: {}]   ;;  %s5616_s8 = inlined_call_operand.vmem [shape: f32[1,32], index: 8, kind: input, shape index: {}]   ;;  %s5617_s9 = inlined_call_operand.vmem [shape: bf16[32,384], index: 9, kind: input, shape index: {}]   ;;  %s5618_s10 = inlined_call_operand.vmem [shape: bf16[32,384], index: 10, kind: input, shape index: {}]   ;;  %s5619_s11 = inlined_call_operand.vmem [shape: bf16[32,384], index: 11, kind: input, shape index: {}]   ;;  %s5620_s12 = inlined_call_operand.vmem [shape: f32[1,384], index: 12, kind: input, shape index: {}]   ;;  %s5621_s13 = inlined_call_operand.vmem [shape: bf16[128,384], index: 13, kind: input, shape index: {}]   ;;  %s5622_s14 = inlined_call_operand.vmem [shape: f32[1,384], index: 14, kind: input, shape index: {}]   ;;  %s5623_s15 = inlined_call_operand.vmem [shape: bf16[128,8], index: 15, kind: input, shape index: {}]   ;;  %s5624_s16 = inlined_call_operand.vmem [shape: f32[1,8], index: 16, kind: input, shape index: {}]   ;;  %s5625_s17 = inlined_call_operand.hbm [shape: f32[2,8], index: 17, kind: output, shape index: {}]  }
   0x1   :  { %5628 = sst [smem:[#allocation6_spill]] %s5608_s0 }
   0x2   :  { %5629 = sst [smem:[#allocation7_spill]] %s5609_s1 }
   0x3   :  { %v4023_v0 = vld [vmem:[%s5611_s3 + $0x78] sm:$0xff]   ;;  %v4027_v4 = vld [vmem:[%s5611_s3 + $0x70] sm:$0xff]   ;;  %v4031_v8 = vld [vmem:[%s5611_s3 + $0x68] sm:$0xff]   ;;  %s5630_s0 = sld [smem:[#allocation6_spill]]  ;;  %vm1549_vm0 = vcmask 1044480   ;;  %vm4344_vm1 = vmmov 0  }
   0x4   :  { %v4024_v1 = vld [vmem:[%s5611_s3 + $0xf8] sm:$0xff]   ;;  %3538 = vmatprep.subr.bf16.mxu0 %v4023_v0  ;;  %v4028_v5 = vld [vmem:[%s5611_s3 + $0xf0] sm:$0xff]   ;;  %v4032_v9 = vld [vmem:[%s5611_s3 + $0xe8] sm:$0xff]   ;;  %s5631_s25 = sld [smem:[#allocation7_spill]]  ;;  %vm1545_vm2 = vcmask 80896  }
   0x5   :  { %v4025_v2 = vld [vmem:[%s5611_s3 + $0x38] sm:$0xff]   ;;  %3560 = vmatprep.subr.bf16.mxu1 %v4024_v1  ;;  %v4029_v6 = vld [vmem:[%s5611_s3 + $0x30] sm:$0xff]   ;;  %v4033_v10 = vld [vmem:[%s5611_s3 + $0x28] sm:$0xff]  }
   0x6   :  { %v4026_v3 = vld [vmem:[%s5611_s3 + $0xb8] sm:$0xff]   ;;  %3539 = vmatpush3.bf16.msra.mxu0 %v4025_v2  ;;  %v4030_v7 = vld [vmem:[%s5611_s3 + $0xb0] sm:$0xff]   ;;  %v4034_v11 = vld [vmem:[%s5611_s3 + $0xa8] sm:$0xff]  }
   0x7   :  { %3561 = vmatpush3.bf16.msra.mxu1 %v4026_v3  ;;  %3540 = vmatprep.subr.bf16.mxu0 %v4027_v4  ;;  %v4035_v12 = vld [vmem:[%s5611_s3 + $0x60] sm:$0xff]   ;;  %v4039_v16 = vld [vmem:[%s5611_s3 + $0x58] sm:$0xff]   ;;  %v4043_v20 = vld [vmem:[%s5611_s3 + $0x50] sm:$0xff]  }
   0x8   :  { %3562 = vmatprep.subr.bf16.mxu1 %v4028_v5  ;;  %v4036_v13 = vld [vmem:[%s5611_s3 + $0xe0] sm:$0xff]   ;;  %v4040_v17 = vld [vmem:[%s5611_s3 + $0xd8] sm:$0xff]   ;;  %v4044_v21 = vld [vmem:[%s5611_s3 + $0xd0] sm:$0xff]  }
   0x9   :  { %v4037_v14 = vld [vmem:[%s5611_s3 + $0x20] sm:$0xff]   ;;  %v4041_v18 = vld [vmem:[%s5611_s3 + $0x18] sm:$0xff]   ;;  %v4045_v22 = vld [vmem:[%s5611_s3 + $0x10] sm:$0xff]  }
   0xa   :  { %3541 = vmatpush3.bf16.msra.mxu0 %v4029_v6  ;;  %v4038_v15 = vld [vmem:[%s5611_s3 + $0xa0] sm:$0xff]   ;;  %v4042_v19 = vld [vmem:[%s5611_s3 + $0x98] sm:$0xff]   ;;  %v4046_v23 = vld [vmem:[%s5611_s3 + $0x90] sm:$0xff]  }
   0xb   :  { %3563 = vmatpush3.bf16.msra.mxu1 %v4030_v7  ;;  %3542 = vmatprep.subr.bf16.mxu0 %v4031_v8  ;;  %v4047_v24 = vld [vmem:[%s5611_s3 + $0x48] sm:$0xff]   ;;  %v4051_v28 = vld [vmem:[%s5611_s3 + $0x40] sm:$0xff]   ;;  %v4055_v40 = vld [vmem:[%s5611_s3 + $0x178] sm:$0xff]  }
   0xc   :  { %3564 = vmatprep.subr.bf16.mxu1 %v4032_v9  ;;  %v4048_v25 = vld [vmem:[%s5611_s3 + $0xc8] sm:$0xff]   ;;  %v4052_v29 = vld [vmem:[%s5611_s3 + $0xc0] sm:$0xff]   ;;  %v4056_v41 = vld [vmem:[%s5611_s3 + $0x1f8] sm:$0xff]  }
   0xd   :  { %v4049_v26 = vld [vmem:[%s5611_s3 + $0x8] sm:$0xff]   ;;  %v4053_v30 = vld [vmem:[%s5611_s3] sm:$0xff]   ;;  %v4057_v42 = vld [vmem:[%s5611_s3 + $0x138] sm:$0xff]  }
   0xe   :  { %3543 = vmatpush3.bf16.msra.mxu0 %v4033_v10  ;;  %v4050_v27 = vld [vmem:[%s5611_s3 + $0x88] sm:$0xff]   ;;  %v4054_v31 = vld [vmem:[%s5611_s3 + $0x80] sm:$0xff]   ;;  %v4058_v43 = vld [vmem:[%s5611_s3 + $0x1b8] sm:$0xff]  }
   0xf   :  { %3565 = vmatpush3.bf16.msra.mxu1 %v4034_v11  ;;  %3544 = vmatprep.subr.bf16.mxu0 %v4035_v12  ;;  %v58_v32 = vld [vmem:[%s5630_s0] sm:$0xff]  ;;  %v59_v34 = vld [vmem:[%s5630_s0 + $0x8] sm:$0xff]  ;;  %v4059_v44 = vld [vmem:[%s5611_s3 + $0x170] sm:$0xff]  }
  0x10   :  { %3566 = vmatprep.subr.bf16.mxu1 %v4036_v13  ;;  %v62_v33 = vld [vmem:[%s5630_s0 + $0x20] sm:$0xff]  ;;  %v63_v37 = vld [vmem:[%s5630_s0 + $0x28] sm:$0xff]  ;;  %v4060_v45 = vld [vmem:[%s5611_s3 + $0x1f0] sm:$0xff]  }
  0x11   :  { %v3316_v35 = vcombine.low %v58_v32, %v62_v33  ;;  %v3317_v36 = vcombine.high %v58_v32, %v62_v33  ;;  %v3318_v38 = vcombine.low %v59_v34, %v63_v37  ;;  %v3319_v39 = vcombine.high %v59_v34, %v63_v37  ;;  %v4061_v46 = vld [vmem:[%s5611_s3 + $0x130] sm:$0xff]   ;;  %v4063_v48 = vld [vmem:[%s5611_s3 + $0x168] sm:$0xff]   ;;  %v4067_v52 = vld [vmem:[%s5611_s3 + $0x160] sm:$0xff]  }
  0x12   :  { %3545 = vmatpush3.bf16.msra.mxu0 %v4037_v14  ;;  %v4062_v47 = vld [vmem:[%s5611_s3 + $0x1b0] sm:$0xff]   ;;  %v4064_v49 = vld [vmem:[%s5611_s3 + $0x1e8] sm:$0xff]   ;;  %v4068_v53 = vld [vmem:[%s5611_s3 + $0x1e0] sm:$0xff]  }
  0x13   :  { %3567 = vmatpush3.bf16.msra.mxu1 %v4038_v15  ;;  %3546 = vmatprep.subr.bf16.mxu0 %v4039_v16  ;;  %v4065_v50 = vld [vmem:[%s5611_s3 + $0x128] sm:$0xff]   ;;  %v4069_v54 = vld [vmem:[%s5611_s3 + $0x120] sm:$0xff]   ;;  %v4071_v56 = vld [vmem:[%s5611_s3 + $0x158] sm:$0xff]  }
  0x14   :  { %3568 = vmatprep.subr.bf16.mxu1 %v4040_v17  ;;  %657 = vmatprep.mubr.bf16.mxu0 %v3317_v36  ;;  %v4066_v51 = vld [vmem:[%s5611_s3 + $0x1a8] sm:$0xff]   ;;  %v4070_v55 = vld [vmem:[%s5611_s3 + $0x1a0] sm:$0xff]   ;;  %v4072_v57 = vld [vmem:[%s5611_s3 + $0x1d8] sm:$0xff]  }
  0x15   :  { %698 = vmatprep.mubr.bf16.mxu1 %v3319_v39  ;;  %v4073_v58 = vld [vmem:[%s5611_s3 + $0x118] sm:$0xff]   ;;  %v4075_v60 = vld [vmem:[%s5611_s3 + $0x150] sm:$0xff]   ;;  %v4079_v0 = vld [vmem:[%s5611_s3 + $0x148] sm:$0xff]  }
  0x16   :  { %3547 = vmatpush3.bf16.msra.mxu0 %v4041_v18  ;;  %v4074_v59 = vld [vmem:[%s5611_s3 + $0x198] sm:$0xff]   ;;  %v4076_v61 = vld [vmem:[%s5611_s3 + $0x1d0] sm:$0xff]   ;;  %v4080_v1 = vld [vmem:[%s5611_s3 + $0x1c8] sm:$0xff]  }
  0x17   :  { %3569 = vmatpush3.bf16.msra.mxu1 %v4042_v19  ;;  %3548 = vmatprep.subr.bf16.mxu0 %v4043_v20  ;;  %v4077_v62 = vld [vmem:[%s5611_s3 + $0x110] sm:$0xff]   ;;  %v4081_v2 = vld [vmem:[%s5611_s3 + $0x108] sm:$0xff]   ;;  %v4083_v4 = vld [vmem:[%s5611_s3 + $0x140] sm:$0xff]  }
  0x18   :  { %3570 = vmatprep.subr.bf16.mxu1 %v4044_v21  ;;  %v4078_v63 = vld [vmem:[%s5611_s3 + $0x190] sm:$0xff]   ;;  %v4082_v3 = vld [vmem:[%s5611_s3 + $0x188] sm:$0xff]   ;;  %v4084_v5 = vld [vmem:[%s5611_s3 + $0x1c0] sm:$0xff]  }
  0x19   :  { %v4085_v6 = vld [vmem:[%s5611_s3 + $0x100] sm:$0xff]   ;;  %v60_v8 = vld [vmem:[%s5630_s0 + $0x10] sm:$0xff]  ;;  %v61_v12 = vld [vmem:[%s5630_s0 + $0x18] sm:$0xff] }
  0x1a   :  { %3549 = vmatpush3.bf16.msra.mxu0 %v4045_v22  ;;  %v4086_v7 = vld [vmem:[%s5611_s3 + $0x180] sm:$0xff]   ;;  %v64_v9 = vld [vmem:[%s5630_s0 + $0x30] sm:$0xff]  ;;  %v65_v13 = vld [vmem:[%s5630_s0 + $0x38] sm:$0xff] }
  0x1b   :  { %3571 = vmatpush3.bf16.msra.mxu1 %v4046_v23  ;;  %3550 = vmatprep.subr.bf16.mxu0 %v4047_v24  ;;  %v3320_v10 = vcombine.low %v60_v8, %v64_v9  ;;  %v3321_v11 = vcombine.high %v60_v8, %v64_v9  ;;  %v3322_v14 = vcombine.low %v61_v12, %v65_v13  ;;  %v4087_v16 = vld [vmem:[%s5613_s5 + $0x78] sm:$0xff]   ;;  %v4091_v20 = vld [vmem:[%s5613_s5 + $0x70] sm:$0xff]   ;;  %v4095_v24 = vld [vmem:[%s5613_s5 + $0x68] sm:$0xff]  }
  0x1c   :  { %3572 = vmatprep.subr.bf16.mxu1 %v4048_v25  ;;  %v3323_v15 = vcombine.high %v61_v12, %v65_v13  ;;  %v4088_v17 = vld [vmem:[%s5613_s5 + $0xf8] sm:$0xff]   ;;  %v4092_v21 = vld [vmem:[%s5613_s5 + $0xf0] sm:$0xff]   ;;  %v4096_v25 = vld [vmem:[%s5613_s5 + $0xe8] sm:$0xff]  }
  0x1d   :  { %v4089_v18 = vld [vmem:[%s5613_s5 + $0x38] sm:$0xff]   ;;  %v4093_v22 = vld [vmem:[%s5613_s5 + $0x30] sm:$0xff]  }
  0x1e   :  { %3551 = vmatpush3.bf16.msra.mxu0 %v4049_v26  ;;  %v4090_v19 = vld [vmem:[%s5613_s5 + $0xb8] sm:$0xff]   ;;  %v4094_v23 = vld [vmem:[%s5613_s5 + $0xb0] sm:$0xff]   ;;  %v4097_v26 = vld [vmem:[%s5613_s5 + $0x28] sm:$0xff]  }
  0x1f   :  { %3573 = vmatpush3.bf16.msra.mxu1 %v4050_v27  ;;  %3552 = vmatprep.subr.bf16.mxu0 %v4051_v28  ;;  %v4098_v27 = vld [vmem:[%s5613_s5 + $0xa8] sm:$0xff]   ;;  %v4099_v28 = vld [vmem:[%s5613_s5 + $0x60] sm:$0xff]   ;;  %v4103_v32 = vld [vmem:[%s5613_s5 + $0x58] sm:$0xff]  }
  0x20   :  { %3574 = vmatprep.subr.bf16.mxu1 %v4052_v29  ;;  %v4100_v29 = vld [vmem:[%s5613_s5 + $0xe0] sm:$0xff]   ;;  %v4104_v33 = vld [vmem:[%s5613_s5 + $0xd8] sm:$0xff]   ;;  %v4107_v36 = vld [vmem:[%s5613_s5 + $0x50] sm:$0xff]  }
  0x21   :  { %v4105_v34 = vld [vmem:[%s5613_s5 + $0x18] sm:$0xff]   ;;  %v4108_v37 = vld [vmem:[%s5613_s5 + $0xd0] sm:$0xff]  }
  0x22   :  { %3553 = vmatpush3.bf16.msra.mxu0 %v4053_v30  ;;  %v4101_v30 = vld [vmem:[%s5613_s5 + $0x20] sm:$0xff]   ;;  %v4110_v39 = vld [vmem:[%s5613_s5 + $0x90] sm:$0xff]   ;;  %v4135_v8 = vld [vmem:[%s5613_s5 + $0x158] sm:$0xff]  }
  0x23   :  { %3575 = vmatpush3.bf16.msra.mxu1 %v4054_v31  ;;  %3582 = vmatprep.subr.bf16.mxu0 %v4055_v40  ;;  %v4102_v31 = vld [vmem:[%s5613_s5 + $0xa0] sm:$0xff]   ;;  %v4111_v40 = vld [vmem:[%s5613_s5 + $0x48] sm:$0xff]   ;;  %v4136_v9 = vld [vmem:[%s5613_s5 + $0x1d8] sm:$0xff]  }
  0x24   :  { %3604 = vmatprep.subr.bf16.mxu1 %v4056_v41  ;;  %v4112_v41 = vld [vmem:[%s5613_s5 + $0xc8] sm:$0xff]   ;;  %v4139_v12 = vld [vmem:[%s5613_s5 + $0x150] sm:$0xff]  }
  0x25   :  { %658 = vmatmul.mubr.bf16.vlgmr.msra.gmra.mxu0 %v3316_v35  ;;  %v4106_v35 = vld [vmem:[%s5613_s5 + $0x98] sm:$0xff]   ;;  %v4140_v13 = vld [vmem:[%s5613_s5 + $0x1d0] sm:$0xff]  }
  0x26   :  { %699 = vmatmul.mubr.bf16.vlgmr.msra.gmra.mxu1 %v3318_v38  ;;  %3583 = vmatpush3.bf16.msra.mxu0 %v4057_v42  ;;  %v4109_v38 = vld [vmem:[%s5613_s5 + $0x10] sm:$0xff]   ;;  %v4113_v42 = vld [vmem:[%s5613_s5 + $0x8] sm:$0xff]  }
  0x27   :  { %3605 = vmatpush3.bf16.msra.mxu1 %v4058_v43  ;;  %3584 = vmatprep.subr.bf16.mxu0 %v4059_v44  ;;  %v4114_v43 = vld [vmem:[%s5613_s5 + $0x88] sm:$0xff]   ;;  %v4115_v44 = vld [vmem:[%s5613_s5 + $0x40] sm:$0xff]  }
  0x28   :  { %3606 = vmatprep.subr.bf16.mxu1 %v4060_v45  ;;  %739 = vmatprep.mubr.bf16.mxu0 %v3321_v11  ;;  %v4116_v45 = vld [vmem:[%s5613_s5 + $0xc0] sm:$0xff]   ;;  %v4138_v11 = vld [vmem:[%s5613_s5 + $0x198] sm:$0xff]  }
  0x29   :  { %780 = vmatprep.mubr.bf16.mxu1 %v3323_v15  ;;  %v4142_v15 = vld [vmem:[%s5613_s5 + $0x190] sm:$0xff]  }
  0x2a   :  { %3585 = vmatpush3.bf16.msra.mxu0 %v4061_v46  ;;  %v4117_v46 = vld [vmem:[%s5613_s5] sm:$0xff]  }
  0x2b   :  { %3607 = vmatpush3.bf16.msra.mxu1 %v4062_v47  ;;  %3586 = vmatprep.subr.bf16.mxu0 %v4063_v48  ;;  %v4118_v47 = vld [vmem:[%s5613_s5 + $0x80] sm:$0xff]  }
  0x2c   :  { %3608 = vmatprep.subr.bf16.mxu1 %v4064_v49  ;;  %v791_v48 = vld [vmem:[%s5631_s25] sm:$0xff] }
  0x2d   :  { %v795_v49 = vld [vmem:[%s5631_s25 + $0x20] sm:$0xff] }
  0x2e   :  { %3587 = vmatpush3.bf16.msra.mxu0 %v4065_v50  ;;  %v792_v50 = vld [vmem:[%s5631_s25 + $0x8] sm:$0xff] }
  0x2f   :  { %3609 = vmatpush3.bf16.msra.mxu1 %v4066_v51  ;;  %3588 = vmatprep.subr.bf16.mxu0 %v4067_v52  ;;  %v796_v51 = vld [vmem:[%s5631_s25 + $0x28] sm:$0xff]  ;;  %v3389_v52 = vcombine.low %v791_v48, %v795_v49 }
  0x30   :  { %3610 = vmatprep.subr.bf16.mxu1 %v4068_v53  ;;  %v3390_v53 = vcombine.high %v791_v48, %v795_v49 }
  0x32   :  { %3589 = vmatpush3.bf16.msra.mxu0 %v4069_v54  ;;  %v3391_v54 = vcombine.low %v792_v50, %v796_v51 }
  0x33   :  { %3611 = vmatpush3.bf16.msra.mxu1 %v4070_v55  ;;  %3590 = vmatprep.subr.bf16.mxu0 %v4071_v56  ;;  %v3392_v55 = vcombine.high %v792_v50, %v796_v51  ;;  %v4119_v56 = vld [vmem:[%s5613_s5 + $0x178] sm:$0xff]  }
  0x34   :  { %3612 = vmatprep.subr.bf16.mxu1 %v4072_v57  ;;  %v4120_v57 = vld [vmem:[%s5613_s5 + $0x1f8] sm:$0xff]  }
  0x36   :  { %3591 = vmatpush3.bf16.msra.mxu0 %v4073_v58  ;;  %v4121_v58 = vld [vmem:[%s5613_s5 + $0x138] sm:$0xff]  }
  0x37   :  { %3613 = vmatpush3.bf16.msra.mxu1 %v4074_v59  ;;  %3592 = vmatprep.subr.bf16.mxu0 %v4075_v60  ;;  %v4122_v59 = vld [vmem:[%s5613_s5 + $0x1b8] sm:$0xff]   ;;  %v4123_v60 = vld [vmem:[%s5613_s5 + $0x170] sm:$0xff]  }
  0x38   :  { %3614 = vmatprep.subr.bf16.mxu1 %v4076_v61  ;;  %v4124_v61 = vld [vmem:[%s5613_s5 + $0x1f0] sm:$0xff]  }
  0x3a   :  { %3593 = vmatpush3.bf16.msra.mxu0 %v4077_v62  ;;  %v4125_v62 = vld [vmem:[%s5613_s5 + $0x130] sm:$0xff]  }
  0x3b   :  { %3615 = vmatpush3.bf16.msra.mxu1 %v4078_v63  ;;  %3594 = vmatprep.subr.bf16.mxu0 %v4079_v0  ;;  %v4126_v63 = vld [vmem:[%s5613_s5 + $0x1b0] sm:$0xff]   ;;  %v4127_v0 = vld [vmem:[%s5613_s5 + $0x168] sm:$0xff]  }
  0x3c   :  { %3616 = vmatprep.subr.bf16.mxu1 %v4080_v1  ;;  %v4128_v1 = vld [vmem:[%s5613_s5 + $0x1e8] sm:$0xff]  }
  0x3e   :  { %3595 = vmatpush3.bf16.msra.mxu0 %v4081_v2  ;;  %v4129_v2 = vld [vmem:[%s5613_s5 + $0x128] sm:$0xff]  }
  0x3f   :  { %3617 = vmatpush3.bf16.msra.mxu1 %v4082_v3  ;;  %3596 = vmatprep.subr.bf16.mxu0 %v4083_v4  ;;  %v4130_v3 = vld [vmem:[%s5613_s5 + $0x1a8] sm:$0xff]   ;;  %v4131_v4 = vld [vmem:[%s5613_s5 + $0x160] sm:$0xff]  }
  0x40   :  { %3618 = vmatprep.subr.bf16.mxu1 %v4084_v5  ;;  %v4132_v5 = vld [vmem:[%s5613_s5 + $0x1e0] sm:$0xff]  }
  0x42   :  { %3597 = vmatpush3.bf16.msra.mxu0 %v4085_v6  ;;  %v4133_v6 = vld [vmem:[%s5613_s5 + $0x120] sm:$0xff]  }
  0x43   :  { %3619 = vmatpush3.bf16.msra.mxu1 %v4086_v7  ;;  %3626 = vmatprep.subr.bf16.mxu0 %v4087_v16  ;;  %v4134_v7 = vld [vmem:[%s5613_s5 + $0x1a0] sm:$0xff]   ;;  %v4143_v16 = vld [vmem:[%s5613_s5 + $0x148] sm:$0xff]  }
  0x44   :  { %3648 = vmatprep.subr.bf16.mxu1 %v4088_v17  ;;  %v4144_v17 = vld [vmem:[%s5613_s5 + $0x1c8] sm:$0xff]  }
  0x45   :  { %740 = vmatmul.mubr.bf16.vlgmr.msra.gmra.mxu0 %v3320_v10  ;;  %v4137_v10 = vld [vmem:[%s5613_s5 + $0x118] sm:$0xff]  }
  0x46   :  { %781 = vmatmul.mubr.bf16.vlgmr.msra.gmra.mxu1 %v3322_v14  ;;  %3627 = vmatpush3.bf16.msra.mxu0 %v4089_v18  ;;  %v4141_v14 = vld [vmem:[%s5613_s5 + $0x110] sm:$0xff]   ;;  %v4145_v18 = vld [vmem:[%s5613_s5 + $0x108] sm:$0xff]  }
  0x47   :  { %3649 = vmatpush3.bf16.msra.mxu1 %v4090_v19  ;;  %3628 = vmatprep.subr.bf16.mxu0 %v4091_v20  ;;  %v4146_v19 = vld [vmem:[%s5613_s5 + $0x188] sm:$0xff]   ;;  %v4147_v20 = vld [vmem:[%s5613_s5 + $0x140] sm:$0xff]  }
  0x48   :  { %3650 = vmatprep.subr.bf16.mxu1 %v4092_v21  ;;  %1390 = vmatprep.mubr.bf16.mxu0 %v3390_v53  ;;  %v4148_v21 = vld [vmem:[%s5613_s5 + $0x1c0] sm:$0xff]  }
  0x49   :  { %1431 = vmatprep.mubr.bf16.mxu1 %v3392_v55 }
  0x4a   :  { %3629 = vmatpush3.bf16.msra.mxu0 %v4093_v22  ;;  %v4149_v22 = vld [vmem:[%s5613_s5 + $0x100] sm:$0xff]  }
  0x4b   :  { %3651 = vmatpush3.bf16.msra.mxu1 %v4094_v23  ;;  %3630 = vmatprep.subr.bf16.mxu0 %v4095_v24  ;;  %v4150_v23 = vld [vmem:[%s5613_s5 + $0x180] sm:$0xff]   ;;  %v793_v24 = vld [vmem:[%s5631_s25 + $0x10] sm:$0xff] }
  0x4c   :  { %3652 = vmatprep.subr.bf16.mxu1 %v4096_v25  ;;  %v797_v25 = vld [vmem:[%s5631_s25 + $0x30] sm:$0xff] }
  0x4e   :  { %3631 = vmatpush3.bf16.msra.mxu0 %v4097_v26  ;;  %v794_v26 = vld [vmem:[%s5631_s25 + $0x18] sm:$0xff] }
  0x4f   :  { %3653 = vmatpush3.bf16.msra.mxu1 %v4098_v27  ;;  %3632 = vmatprep.subr.bf16.mxu0 %v4099_v28  ;;  %v3393_v27 = vcombine.low %v793_v24, %v797_v25  ;;  %v3394_v28 = vcombine.high %v793_v24, %v797_v25 }
  0x50   :  { %3654 = vmatprep.subr.bf16.mxu1 %v4100_v29  ;;  %v798_v29 = vld [vmem:[%s5631_s25 + $0x38] sm:$0xff] }
  0x52   :  { %3633 = vmatpush3.bf16.msra.mxu0 %v4101_v30  ;;  %v3395_v30 = vcombine.low %v794_v26, %v798_v29 }
  0x53   :  { %3655 = vmatpush3.bf16.msra.mxu1 %v4102_v31  ;;  %3634 = vmatprep.subr.bf16.mxu0 %v4103_v32  ;;  %v3396_v31 = vcombine.high %v794_v26, %v798_v29  ;;  %v4343_v32 = vmov 0.0  }
  0x54   :  { %3656 = vmatprep.subr.bf16.mxu1 %v4104_v33  ;;  %v4151_v33 = vld [vmem:[%s5615_s7] sm:$0x1f]  }
  0x56   :  { %3635 = vmatpush3.bf16.msra.mxu0 %v4105_v34  ;;  %v1551_v34 = vsel %vm1549_vm0, %v4151_v33, 0 }
  0x57   :  { %3657 = vmatpush3.bf16.msra.mxu1 %v4106_v35  ;;  %3636 = vmatprep.subr.bf16.mxu0 %v4107_v36  ;;  %v4152_v35 = vld [vmem:[%s5610_s2] sm:$0xff]   ;;  %v4155_v36 = vld [vmem:[%s5617_s9 + $0x1c] ss:$12 sps:$4 sm:$0xff]  }
  0x58   :  { %3658 = vmatprep.subr.bf16.mxu1 %v4108_v37  ;;  %v4153_v37 = vld [vmem:[%s5617_s9 + $0x18] ss:$12 sps:$4 sm:$0xff]  }
  0x5a   :  { %3637 = vmatpush3.bf16.msra.mxu0 %v4109_v38  ;;  %v4156_v38 = vld [vmem:[%s5617_s9] ss:$12 sps:$4 sm:$0xff]  }
  0x5b   :  { %3659 = vmatpush3.bf16.msra.mxu1 %v4110_v39  ;;  %3638 = vmatprep.subr.bf16.mxu0 %v4111_v40  ;;  %v4158_v39 = vld [vmem:[%s5617_s9 + $0x4] ss:$12 sps:$4 sm:$0xff]   ;;  %v4345_v40 = vmov 0  }
  0x5c   :  { %3660 = vmatprep.subr.bf16.mxu1 %v4112_v41 }
  0x5e   :  { %3639 = vmatpush3.bf16.msra.mxu0 %v4113_v42 }
  0x5f   :  { %3661 = vmatpush3.bf16.msra.mxu1 %v4114_v43  ;;  %3640 = vmatprep.subr.bf16.mxu0 %v4115_v44 }
  0x60   :  { %3662 = vmatprep.subr.bf16.mxu1 %v4116_v45 }
  0x62   :  { %3641 = vmatpush3.bf16.msra.mxu0 %v4117_v46 }
  0x63   :  { %3663 = vmatpush3.bf16.msra.mxu1 %v4118_v47  ;;  %3670 = vmatprep.subr.bf16.mxu0 %v4119_v56 }
  0x64   :  { %3692 = vmatprep.subr.bf16.mxu1 %v4120_v57 }
  0x65   :  { %1391 = vmatmul.mubr.bf16.vlgmr.msra.gmra.mxu0 %v3389_v52 }
  0x66   :  { %1432 = vmatmul.mubr.bf16.vlgmr.msra.gmra.mxu1 %v3391_v54  ;;  %3671 = vmatpush3.bf16.msra.mxu0 %v4121_v58 }
  0x67   :  { %3693 = vmatpush3.bf16.msra.mxu1 %v4122_v59  ;;  %3672 = vmatprep.subr.bf16.mxu0 %v4123_v60 }
  0x68   :  { %3694 = vmatprep.subr.bf16.mxu1 %v4124_v61  ;;  %1472 = vmatprep.mubr.bf16.mxu0 %v3394_v28 }
  0x69   :  { %1513 = vmatprep.mubr.bf16.mxu1 %v3396_v31 }
  0x6a   :  { %3673 = vmatpush3.bf16.msra.mxu0 %v4125_v62 }
  0x6b   :  { %3695 = vmatpush3.bf16.msra.mxu1 %v4126_v63  ;;  %3674 = vmatprep.subr.bf16.mxu0 %v4127_v0 }
  0x6c   :  { %3696 = vmatprep.subr.bf16.mxu1 %v4128_v1 }
  0x6e   :  { %3675 = vmatpush3.bf16.msra.mxu0 %v4129_v2 }
  0x6f   :  { %3697 = vmatpush3.bf16.msra.mxu1 %v4130_v3  ;;  %3676 = vmatprep.subr.bf16.mxu0 %v4131_v4 }
  0x70   :  { %3698 = vmatprep.subr.bf16.mxu1 %v4132_v5 }
  0x72   :  { %3677 = vmatpush3.bf16.msra.mxu0 %v4133_v6 }
  0x73   :  { %3699 = vmatpush3.bf16.msra.mxu1 %v4134_v7  ;;  %3678 = vmatprep.subr.bf16.mxu0 %v4135_v8 }
  0x74   :  { %3700 = vmatprep.subr.bf16.mxu1 %v4136_v9 }
  0x76   :  { %3679 = vmatpush3.bf16.msra.mxu0 %v4137_v10 }
  0x77   :  { %3701 = vmatpush3.bf16.msra.mxu1 %v4138_v11  ;;  %3680 = vmatprep.subr.bf16.mxu0 %v4139_v12 }
  0x78   :  { %3702 = vmatprep.subr.bf16.mxu1 %v4140_v13 }
  0x7a   :  { %3681 = vmatpush3.bf16.msra.mxu0 %v4141_v14 }
  0x7b   :  { %3703 = vmatpush3.bf16.msra.mxu1 %v4142_v15  ;;  %3682 = vmatprep.subr.bf16.mxu0 %v4143_v16 }
  0x7c   :  { %3704 = vmatprep.subr.bf16.mxu1 %v4144_v17 }
  0x7e   :  { %3683 = vmatpush3.bf16.msra.mxu0 %v4145_v18 }
  0x7f   :  { %3705 = vmatpush3.bf16.msra.mxu1 %v4146_v19  ;;  %3684 = vmatprep.subr.bf16.mxu0 %v4147_v20 }
  0x80   :  { %3706 = vmatprep.subr.bf16.mxu1 %v4148_v21 }
  0x82   :  { %3685 = vmatpush3.bf16.msra.mxu0 %v4149_v22 }
  0x83   :  { %3707 = vmatpush3.bf16.msra.mxu1 %v4150_v23  ;;  %3806 = vmatprep.subr.bf16.mxu0 %v4343_v32 }
  0x84   :  { %1781 = vmatprep.subr.bf16.mxu1 %v4155_v36 }
  0x85   :  { %1473 = vmatmul.mubr.bf16.vlgmr.msra.gmra.mxu0 %v3393_v27 }
  0x86   :  { %1514 = vmatmul.mubr.bf16.vlgmr.msra.gmra.mxu1 %v3395_v30  ;;  %3807 = vmatpush3.bf16.msra.mxu0 %v1551_v34 }
  0x87   :  { %3808 = vmatprep.mubr.msk.bf16.mxu0 %vm4344_vm1, %v4343_v32  ;;  %1782 = vmatpush1.bf16.msra.mxu1 %v4153_v37 }
  0x88   :  { %1801 = vmatprep.mubr.bf16.mxu1 %v4345_v40  ;;  %1783 = vmatprep.subr.bf16.mxu1 %v4158_v39 }
  0x8b   :  { %1784 = vmatpush1.bf16.msra.mxu1 %v4156_v38 }
  0x8d   :  { %3809 = vmatmul.mubr.msk.bf16.vlgmr.msra.gmra.mxu0 %vm1545_vm2, %v4152_v35 }
  0x8e   :  { %1682 = vmatprep.mubr.bf16.mxu0 %v4345_v40 }
  0x8f   :  { %22 = vsyncpa [#allocation4], 0  ;;  %v4161_v41 = vld [vmem:[%s5618_s10 + $0x1c] ss:$12 sps:$4 sm:$0xff]   ;;  %v4159_v42 = vld [vmem:[%s5618_s10 + $0x18] ss:$12 sps:$4 sm:$0xff]  }
  0x90   :  { %v4164_v43 = vld [vmem:[%s5619_s11 + $0x1c] ss:$12 sps:$4 sm:$0xff]   ;;  %1662 = vmatprep.subr.bf16.mxu0 %v4161_v41  ;;  %v4167_v44 = vld [vmem:[%s5618_s10 + $0x4] ss:$12 sps:$4 sm:$0xff]   ;;  %v4165_v45 = vld [vmem:[%s5618_s10] ss:$12 sps:$4 sm:$0xff]  }
  0x91   :  { %1663 = vmatpush1.bf16.msra.mxu0 %v4159_v42  ;;  %1909 = vmatprep.subr.bf16.mxu1 %v4164_v43  ;;  %v3315_v53 = vld [vmem:[%s5612_s4] ss:$0 sm:$0xff]  ;;  %vm1646_vm3 = vcmask 261120   ;;  %v4162_v17 = vld [vmem:[%s5619_s11 + $0x18] ss:$12 sps:$4 sm:$0xff]   ;;  %s4347_s30 = smov 64  }
  0x92   :  { %1664 = vmatprep.subr.bf16.mxu0 %v4167_v44  ;;  %v4170_v19 = vld [vmem:[%s5619_s11 + $0x4] ss:$12 sps:$4 sm:$0xff]   ;;  %v4168_v20 = vld [vmem:[%s5619_s11] ss:$12 sps:$4 sm:$0xff]   ;;  %vm2122_vm4 = vcmask 523264   ;;  %vm2124_vm5 = vcmask 785408  }
  0x93   :  { %v4936_v21 = vld [vmem:[%s5621_s13 + $0xac] ss:$12 sps:$4 sm:$0xff]   ;;  %v3388_v29 = vld [vmem:[%s5614_s6] ss:$0 sm:$0xff]  ;;  %s4349_s24 = smov [#allocation3]   ;;  %vm3299_vm6 = vcmask 58368  }
  0x94   :  { %s3307_s6 = sshll.u32 %s4349_s24, 4  ;;  %s3308_s6 = int_to_ptr.vmem [resolvable:$true] %s3307_s6 }
  0x95   :  { %1665 = vmatpush1.bf16.msra.mxu0 %v4165_v45  ;;  %s4321_s26 = scalar_lea.vmem %s3308_s6, 32  ;;  %p4326_p1 = scmp.lt.s32.totalorder %s3308_s6, %s3308_s6 }
  0x96   :  { %3812 = vmatprep.subr.bf16.mxu0 %v4343_v32  ;;  %p4322_p0 = scmp.ne.s32.totalorder %s3308_s6, %s4321_s26  ;;  %p4327_p2 = scmp.lt.s32.totalorder %s4321_s26, %s4321_s26 }
  0x98   :  { %p4328_p3 = por %p4327_p2, %p4326_p1 }
  0x9a   :  { %p4329_p4 = pnand %p4328_p3, %p4322_p0 }
  0xe5   :  { %v3554_v46 = vpop.f32.mrf.mxu0 }
  0xe6   :  { %v3576_v47 = vpop.f32.mrf.mxu1 }
  0xe7   :  { %v3555_v48 = vpop.f32.mrf.mxu0 }
  0xe8   :  { %v3577_v49 = vpop.f32.mrf.mxu1  ;;  %v3556_v51 = vadd.f32 %v3555_v48, %v3554_v46 }
  0xe9   :  { %v3557_v50 = vpop.f32.mrf.mxu0  ;;  %v3578_v56 = vadd.f32 %v3577_v49, %v3576_v47  ;;  %v3461_v49 = vld [vmem:[%s5616_s8] ss:$0 sm:$0xff]  ;;  %s4346_s8 = smov 32  }
  0xea   :  { %v3579_v52 = vpop.f32.mrf.mxu1  ;;  %v660_v55 = vadd.f32 %v3556_v51, %v3315_v53 }
  0xeb   :  { %v3558_v54 = vpop.f32.mrf.mxu0 }
  0xec   :  { %v3559_v57 = vadd.f32 %v3558_v54, %v3557_v50  ;;  %v3580_v58 = vpop.f32.mrf.mxu1  ;;  %v701_v62 = vadd.f32 %v3578_v56, %v660_v55 }
  0xed   :  { %v3581_v3 = vadd.f32 %v3580_v58, %v3579_v52 }
  0xee   :  { %v663_v63 = vadd.f32 %v3559_v57, %v3315_v53 }
  0xf0   :  { %v704_v8 = vadd.f32 %v3581_v3, %v663_v63  ;;  %v4171_v3 = vld [vmem:[%s5618_s10 + $0x20] ss:$12 sps:$4 sm:$0xff]  }
 0x105   :  { %v3598_v59 = vpop.f32.mrf.mxu0 }
 0x106   :  { %v3620_v60 = vpop.f32.mrf.mxu1 }
 0x107   :  { %v3599_v61 = vpop.f32.mrf.mxu0 }
 0x108   :  { %v3600_v0 = vadd.f32 %v3599_v61, %v3598_v59  ;;  %v3621_v1 = vpop.f32.mrf.mxu1 }
 0x109   :  { %v3601_v2 = vpop.f32.mrf.mxu0  ;;  %v3622_v5 = vadd.f32 %v3621_v1, %v3620_v60 }
 0x10a   :  { %v742_v4 = vadd.f32 %v3600_v0, %v701_v62  ;;  %v3623_v6 = vpop.f32.mrf.mxu1 }
 0x10b   :  { %v3602_v7 = vpop.f32.mrf.mxu0 }
 0x10c   :  { %v3603_v9 = vadd.f32 %v3602_v7, %v3601_v2  ;;  %v3624_v10 = vpop.f32.mrf.mxu1  ;;  %v783_v11 = vadd.f32 %v3622_v5, %v742_v4 }
 0x10d   :  { %v3625_v13 = vadd.f32 %v3624_v10, %v3623_v6  ;;  %v4951_v6 = vld [vmem:[%s5621_s13 + $0xa8] ss:$12 sps:$4 sm:$0xff]   ;;  %v4970_v10 = vld [vmem:[%s5621_s13 + $0x90] ss:$12 sps:$4 sm:$0xff]  }
 0x10e   :  { %v745_v12 = vadd.f32 %v3603_v9, %v704_v8  ;;  %v789_v15 = vmax.f32 %v783_v11, 0.0  ;;  %v4957_v8 = vld [vmem:[%s5621_s13 + $0x94] ss:$12 sps:$4 sm:$0xff]   ;;  %v4976_v11 = vld [vmem:[%s5621_s13 + $0x7c] ss:$12 sps:$4 sm:$0xff]  }
 0x10f   :  { %v4175_v9 = vld [vmem:[%s5618_s10 + $0x8] ss:$12 sps:$4 sm:$0xff]  }
 0x110   :  { %v4914_v14 = vadd.f32 %v3625_v13, %v745_v12  ;;  %v4179_v12 = vld [vmem:[%s5617_s9 + $0x20] ss:$12 sps:$4 sm:$0xff]   ;;  %v4987_v13 = vld [vmem:[%s5621_s13 + $0x78] ss:$12 sps:$4 sm:$0xff]  }
 0x112   :  { %v790_v16 = vmax.f32 %v4914_v14, 0.0  ;;  %v3529_v14 = vld [vmem:[%s5624_s16] ss:$0 sm:$0xff] }
 0x114   :  { %v4922_v18 = vpack.c.bf16 %v790_v16, %v789_v15  ;;  %v4994_v15 = vld [vmem:[%s5621_s13 + $0x64] ss:$12 sps:$4 sm:$0xff]  }
 0x116   :  { %3479 = vmatmul.mubr.msk.bf16.vlgmr.msra.gmra.mxu1 %vm1646_vm3, %v4922_v18 }
 0x117   :  { %1910 = vmatpush1.bf16.msra.mxu1 %v4162_v17  ;;  %1929 = vmatprep.mubr.bf16.mxu1 %v4345_v40  ;;  %v4183_v17 = vld [vmem:[%s5617_s9 + $0x8] ss:$12 sps:$4 sm:$0xff]  }
 0x118   :  { %1911 = vmatprep.subr.bf16.mxu1 %v4170_v19  ;;  %v5006_v19 = vld [vmem:[%s5621_s13 + $0x60] ss:$12 sps:$4 sm:$0xff]  }
 0x11b   :  { %1912 = vmatpush1.bf16.msra.mxu1 %v4168_v20  ;;  %v5012_v20 = vld [vmem:[%s5621_s13 + $0x4c] ss:$12 sps:$4 sm:$0xff]  }
 0x11c   :  { %2304 = vmatprep.subr.bf16.mxu1 %v4936_v21 }
 0x125   :  { %v3642_v22 = vpop.f32.mrf.mxu0 }
 0x126   :  { %v3664_v23 = vpop.f32.mrf.mxu1 }
 0x127   :  { %v3643_v24 = vpop.f32.mrf.mxu0 }
 0x128   :  { %v3665_v25 = vpop.f32.mrf.mxu1  ;;  %v3644_v27 = vadd.f32 %v3643_v24, %v3642_v22  ;;  %v4187_v22 = vld [vmem:[%s5619_s11 + $0x20] ss:$12 sps:$4 sm:$0xff]  }
 0x129   :  { %v3645_v26 = vpop.f32.mrf.mxu0  ;;  %v3666_v33 = vadd.f32 %v3665_v25, %v3664_v23  ;;  %v5022_v23 = vld [vmem:[%s5621_s13 + $0x48] ss:$12 sps:$4 sm:$0xff]  }
 0x12a   :  { %v3667_v28 = vpop.f32.mrf.mxu1  ;;  %v1393_v31 = vadd.f32 %v3644_v27, %v3388_v29  ;;  %v5030_v24 = vld [vmem:[%s5621_s13 + $0x34] ss:$12 sps:$4 sm:$0xff]   ;;  %v5053_v27 = vld [vmem:[%s5621_s13 + $0xb0] ss:$12 sps:$4 sm:$0xff]  }
 0x12b   :  { %v3646_v30 = vpop.f32.mrf.mxu0  ;;  %v4191_v25 = vld [vmem:[%s5619_s11 + $0x8] ss:$12 sps:$4 sm:$0xff]  }
 0x12c   :  { %v3647_v34 = vadd.f32 %v3646_v30, %v3645_v26  ;;  %v3668_v35 = vpop.f32.mrf.mxu1  ;;  %v1434_v39 = vadd.f32 %v3666_v33, %v1393_v31  ;;  %v5048_v26 = vld [vmem:[%s5621_s13 + $0x1c] ss:$12 sps:$4 sm:$0xff]   ;;  %v5073_v30 = vld [vmem:[%s5621_s13 + $0x98] ss:$12 sps:$4 sm:$0xff]   ;;  %v5082_v31 = vld [vmem:[%s5621_s13] ss:$12 sps:$4 sm:$0xff]  }
 0x12d   :  { %v3669_v45 = vadd.f32 %v3668_v35, %v3667_v28  ;;  %v5060_v28 = vld [vmem:[%s5621_s13 + $0x18] ss:$12 sps:$4 sm:$0xff]   ;;  %v5089_v33 = vld [vmem:[%s5621_s13 + $0x80] ss:$12 sps:$4 sm:$0xff]   ;;  %v5109_v35 = vld [vmem:[%s5621_s13 + $0x50] ss:$12 sps:$4 sm:$0xff]  }
 0x12e   :  { %v1396_v41 = vadd.f32 %v3647_v34, %v3388_v29  ;;  %v5067_v29 = vld [vmem:[%s5621_s13 + $0x4] ss:$12 sps:$4 sm:$0xff]   ;;  %v5098_v34 = vld [vmem:[%s5621_s13 + $0x68] ss:$12 sps:$4 sm:$0xff]  }
 0x130   :  { %v1437_v50 = vadd.f32 %v3669_v45, %v1396_v41 }
 0x145   :  { %v3686_v36 = vpop.f32.mrf.mxu0 }
 0x146   :  { %v3708_v37 = vpop.f32.mrf.mxu1 }
 0x147   :  { %v3687_v38 = vpop.f32.mrf.mxu0 }
 0x148   :  { %v3688_v42 = vadd.f32 %v3687_v38, %v3686_v36  ;;  %v3709_v43 = vpop.f32.mrf.mxu1  ;;  %v5118_v36 = vld [vmem:[%s5621_s13 + $0x38] ss:$12 sps:$4 sm:$0xff]   ;;  %v5136_v38 = vld [vmem:[%s5621_s13 + $0x8] ss:$12 sps:$4 sm:$0xff]  }
 0x149   :  { %v3689_v44 = vpop.f32.mrf.mxu0  ;;  %v3710_v51 = vadd.f32 %v3709_v43, %v3708_v37  ;;  %v5127_v37 = vld [vmem:[%s5621_s13 + $0x20] ss:$12 sps:$4 sm:$0xff]  }
 0x14a   :  { %v1475_v46 = vadd.f32 %v3688_v42, %v1434_v39  ;;  %v3711_v47 = vpop.f32.mrf.mxu1 }
 0x14b   :  { %v3690_v48 = vpop.f32.mrf.mxu0 }
 0x14c   :  { %v3691_v52 = vadd.f32 %v3690_v48, %v3689_v44  ;;  %v3712_v53 = vpop.f32.mrf.mxu1  ;;  %v1516_v55 = vadd.f32 %v3710_v51, %v1475_v46 }
 0x14d   :  { %v1587_v54 = vpop.f32.mrf.mxu0  ;;  %v3713_v57 = vadd.f32 %v3712_v53, %v3711_v47 }
 0x14e   :  { %v1478_v56 = vadd.f32 %v3691_v52, %v1437_v50  ;;  %v1588_v58 = vadd.f32 %v3461_v49, %v1587_v54  ;;  %v1522_v62 = vmax.f32 %v1516_v55, 0.0 }
 0x14f   :  { %v3810_v59 = vpop.f32.mrf.mxu0 }
 0x150   :  { %v1519_v60 = vadd.f32 %v3713_v57, %v1478_v56  ;;  %v1594_v63 = vmax.f32 %v1588_v58, 0.0 }
 0x151   :  { %v1590_v61 = vpop.f32.mrf.mxu0 }
 0x152   :  { %v1591_v0 = vadd.f32 %v3461_v49, %v1590_v61  ;;  %v1523_v1 = vmax.f32 %v1519_v60, 0.0  ;;  %v1989_v49 = vlaneseq  ;;  %v1987_v61 = vld [vmem:[%s5620_s12] sm:$0x7] }
 0x153   :  { %v3811_v2 = vpop.f32.mrf.mxu0 }
 0x154   :  { %v1595_v4 = vmax.f32 %v1591_v0, 0.0  ;;  %2114 = vrot.lane.b32.xlu0 %v1523_v1, %s4346_s8  ;;  %v1605_v5 = vpack.c.bf16 %v1523_v1, %v1522_v62  ;;  %v5168_v53 = vshrl.u32 %v1989_v49, 7 }
 0x156   :  { %v1853_v7 = vpack.c.bf16 %v1595_v4, %v1594_v63  ;;  %3471 = vmatmul.mubr.msk.bf16.vlgmr.msra.gmra.mxu0 %vm1646_vm3, %v1605_v5  ;;  %v1995_v56 = vsub.s32 1, %v5168_v53  ;;  %v1991_v60 = vsub.s32 0, %v5168_v53 }
 0x157   :  { %3813 = vmatpush3.bf16.msra.mxu0 %v4171_v3  ;;  %3816 = vmatprep.mubr.msk.bf16.mxu0 %vm4344_vm1, %v4343_v32 }
 0x158   :  { %2118 = vrot.lane.b32.xlu0 %v1595_v4, %s4347_s30  ;;  %3487 = vmatmul.mubr.msk.bf16.vlgmr.msra.gmra.mxu1 %vm1646_vm3, %v1853_v7  ;;  %v1996_v1 = vrot.slane %v1987_v61, %v1995_v56 }
 0x159   :  { %2305 = vmatpush1.bf16.msra.mxu1 %v4951_v6  ;;  %3814 = vmatprep.subr.bf16.mxu0 %v4343_v32 }
 0x15a   :  { %2306 = vmatprep.subr.bf16.mxu1 %v4957_v8  ;;  %2336 = vmatprep.mubr.bf16.mxu1 %v4345_v40 }
 0x15b   :  { %3815 = vmatpush3.bf16.msra.mxu0 %v4175_v9 }
 0x15c   :  { %3820 = vmatprep.subr.bf16.mxu0 %v4343_v32 }
 0x15d   :  { %2307 = vmatpush1.bf16.msra.mxu1 %v4970_v10 }
 0x15e   :  { %3817 = vmatmul.mubr.msk.bf16.vlgmr.msra.gmra.mxu0 %vm1646_vm3, %v1605_v5  ;;  %2308 = vmatprep.subr.bf16.mxu1 %v4976_v11  ;;  %v4348_v5 = vmov 1983009808  }
 0x15f   :  { %3821 = vmatpush3.bf16.msra.mxu0 %v4179_v12  ;;  %3824 = vmatprep.mubr.msk.bf16.mxu0 %vm4344_vm1, %v4343_v32  ;;  %v1992_v12 = vrot.slane %v1987_v61, %v1991_v60 }
 0x160   :  { %3822 = vmatprep.subr.bf16.mxu0 %v4343_v32 }
 0x161   :  { %2309 = vmatpush1.bf16.msra.mxu1 %v4987_v13 }
 0x162   :  { %2310 = vmatprep.subr.bf16.mxu1 %v4994_v15 }
 0x163   :  { %3823 = vmatpush3.bf16.msra.mxu0 %v4183_v17  ;;  %v1999_v17 = vsub.s32 2, %v5168_v53 }
 0x164   :  { %3828 = vmatprep.subr.bf16.mxu0 %v4343_v32 }
 0x165   :  { %2311 = vmatpush1.bf16.msra.mxu1 %v5006_v19  ;;  %v2000_v49 = vrot.slane %v1987_v61, %v1999_v17 }
 0x166   :  { %3825 = vmatmul.mubr.msk.bf16.vlgmr.msra.gmra.mxu0 %vm1646_vm3, %v4922_v18  ;;  %2312 = vmatprep.subr.bf16.mxu1 %v5012_v20  ;;  %v5042_v18 = vld [vmem:[%s5621_s13 + $0x30] ss:$12 sps:$4 sm:$0xff]  }
 0x167   :  { %3829 = vmatpush3.bf16.msra.mxu0 %v4187_v22  ;;  %3832 = vmatprep.mubr.msk.bf16.mxu0 %vm4344_vm1, %v4343_v32 }
 0x168   :  { %3830 = vmatprep.subr.bf16.mxu0 %v4343_v32 }
 0x169   :  { %2313 = vmatpush1.bf16.msra.mxu1 %v5022_v23 }
 0x16a   :  { %2314 = vmatprep.subr.bf16.mxu1 %v5030_v24 }
 0x16b   :  { %3831 = vmatpush3.bf16.msra.mxu0 %v4191_v25 }
 0x16c   :  { %3836 = vmatprep.subr.bf16.mxu0 %v4343_v32 }
 0x16d   :  { %2315 = vmatpush1.bf16.msra.mxu1 %v5042_v18 }
 0x16e   :  { %3833 = vmatmul.mubr.msk.bf16.vlgmr.msra.gmra.mxu0 %vm1646_vm3, %v1853_v7  ;;  %2316 = vmatprep.subr.bf16.mxu1 %v5048_v26  ;;  %v2015_v7 = vunpack.c.l.s4 %v4348_v5 }
 0x16f   :  { %3837 = vmatpush3.bf16.msra.mxu0 %v5053_v27  ;;  %3852 = vmatprep.mubr.msk.bf16.mxu0 %vm4344_vm1, %v4343_v32 }
 0x170   :  { %3838 = vmatprep.subr.bf16.mxu0 %v4343_v32 }
 0x171   :  { %2317 = vmatpush1.bf16.msra.mxu1 %v5060_v28 }
 0x172   :  { %2318 = vmatprep.subr.bf16.mxu1 %v5067_v29 }
 0x173   :  { %3839 = vmatpush3.bf16.msra.mxu0 %v5073_v30 }
 0x174   :  { %3840 = vmatprep.subr.bf16.mxu0 %v4343_v32 }
 0x175   :  { %2319 = vmatpush1.bf16.msra.mxu1 %v5082_v31 }
 0x176   :  { %2413 = vmatprep.subr.bf16.mxu1 %v4936_v21 }
 0x177   :  { %3841 = vmatpush3.bf16.msra.mxu0 %v5089_v33 }
 0x178   :  { %2337 = vmatmul.mubr.bf16.vlgmr.msra.gmra.mxu1 %v4345_v40  ;;  %3842 = vmatprep.subr.bf16.mxu0 %v4343_v32 }
 0x179   :  { %2414 = vmatpush1.bf16.msra.mxu1 %v4951_v6  ;;  %2445 = vmatprep.mubr.bf16.mxu1 %v4345_v40 }
 0x17a   :  { %2415 = vmatprep.subr.bf16.mxu1 %v4957_v8 }
 0x17b   :  { %3843 = vmatpush3.bf16.msra.mxu0 %v5098_v34 }
 0x17c   :  { %3844 = vmatprep.subr.bf16.mxu0 %v4343_v32 }
 0x17d   :  { %2416 = vmatpush1.bf16.msra.mxu1 %v4970_v10 }
 0x17e   :  { %2417 = vmatprep.subr.bf16.mxu1 %v4976_v11 }
 0x17f   :  { %3845 = vmatpush3.bf16.msra.mxu0 %v5109_v35 }
 0x180   :  { %3846 = vmatprep.subr.bf16.mxu0 %v4343_v32 }
 0x181   :  { %2418 = vmatpush1.bf16.msra.mxu1 %v4987_v13 }
 0x182   :  { %2419 = vmatprep.subr.bf16.mxu1 %v4994_v15 }
 0x183   :  { %3847 = vmatpush3.bf16.msra.mxu0 %v5118_v36 }
 0x184   :  { %3848 = vmatprep.subr.bf16.mxu0 %v4343_v32 }
 0x185   :  { %2420 = vmatpush1.bf16.msra.mxu1 %v5006_v19 }
 0x186   :  { %2421 = vmatprep.subr.bf16.mxu1 %v5012_v20 }
 0x187   :  { %3849 = vmatpush3.bf16.msra.mxu0 %v5127_v37 }
 0x188   :  { %3850 = vmatprep.subr.bf16.mxu0 %v4343_v32 }
 0x189   :  { %2422 = vmatpush1.bf16.msra.mxu1 %v5022_v23 }
 0x18a   :  { %2423 = vmatprep.subr.bf16.mxu1 %v5030_v24 }
 0x18b   :  { %3851 = vmatpush3.bf16.msra.mxu0 %v5136_v38 }
 0x18c   :  { %3856 = vmatprep.subr.bf16.mxu0 %v4343_v32 }
 0x18d   :  { %2424 = vmatpush1.bf16.msra.mxu1 %v5042_v18 }
 0x18e   :  { %3853 = vmatmul.mubr.bf16.vlgmr.msra.gmra.mxu0 %v4345_v40  ;;  %2425 = vmatprep.subr.bf16.mxu1 %v5048_v26 }
 0x18f   :  { %3857 = vmatpush3.bf16.msra.mxu0 %v5053_v27  ;;  %3872 = vmatprep.mubr.msk.bf16.mxu0 %vm4344_vm1, %v4343_v32 }
 0x190   :  { %3858 = vmatprep.subr.bf16.mxu0 %v4343_v32 }
 0x191   :  { %2426 = vmatpush1.bf16.msra.mxu1 %v5060_v28 }
 0x192   :  { %2427 = vmatprep.subr.bf16.mxu1 %v5067_v29 }
 0x193   :  { %3859 = vmatpush3.bf16.msra.mxu0 %v5073_v30 }
 0x194   :  { %3860 = vmatprep.subr.bf16.mxu0 %v4343_v32 }
 0x195   :  { %2428 = vmatpush1.bf16.msra.mxu1 %v5082_v31 }
 0x196   :  { %2522 = vmatprep.subr.bf16.mxu1 %v4936_v21 }
 0x197   :  { %3861 = vmatpush3.bf16.msra.mxu0 %v5089_v33 }
 0x198   :  { %3862 = vmatprep.subr.bf16.mxu0 %v4343_v32 }
 0x19b   :  { %3863 = vmatpush3.bf16.msra.mxu0 %v5098_v34 }
 0x19c   :  { %3864 = vmatprep.subr.bf16.mxu0 %v4343_v32 }
 0x19f   :  { %3865 = vmatpush3.bf16.msra.mxu0 %v5109_v35 }
 0x1a0   :  { %3866 = vmatprep.subr.bf16.mxu0 %v4343_v32 }
 0x1a3   :  { %3867 = vmatpush3.bf16.msra.mxu0 %v5118_v36 }
 0x1a4   :  { %3868 = vmatprep.subr.bf16.mxu0 %v4343_v32 }
 0x1a7   :  { %3869 = vmatpush3.bf16.msra.mxu0 %v5127_v37 }
 0x1a8   :  { %3870 = vmatprep.subr.bf16.mxu0 %v4343_v32 }
 0x1ab   :  { %3871 = vmatpush3.bf16.msra.mxu0 %v5136_v38 }
 0x1ac   :  { %3876 = vmatprep.subr.bf16.mxu0 %v4343_v32 }
 0x1d6   :  { %v1803_v39 = vpop.f32.mrf.mxu1 }
 0x1d8   :  { %v1805_v41 = vpop.f32.mrf.mxu1 }
 0x1da   :  { %v1807_v42 = vpop.f32.mrf.mxu1 }
 0x1dc   :  { %v1809_v45 = vpop.f32.mrf.mxu1 }
 0x216   :  { %v1684_v43 = vpop.f32.mrf.mxu0 }
 0x217   :  { %v1804_v59 = vadd.f32 %v1803_v39, %v1684_v43 }
 0x218   :  { %v1686_v44 = vpop.f32.mrf.mxu0  ;;  %v1931_v47 = vpop.f32.mrf.mxu1 }
 0x219   :  { %v1806_v55 = vadd.f32 %v1805_v41, %v1686_v44  ;;  %v1981_v9 = vadd.f32 %v1931_v47, %v1804_v59  ;;  %v2016_v44 = vunpack.c.0.s8 %v2015_v7 }
 0x21a   :  { %v1688_v46 = vpop.f32.mrf.mxu0  ;;  %v1933_v51 = vpop.f32.mrf.mxu1 }
 0x21b   :  { %v1982_v0 = vadd.f32 %v1933_v51, %v1806_v55  ;;  %v1808_v3 = vadd.f32 %v1807_v42, %v1688_v46  ;;  %v5181_v59 = vsub.s32 %v2016_v44, %v5168_v53 }
 0x21c   :  { %v1690_v48 = vpop.f32.mrf.mxu0  ;;  %v1935_v57 = vpop.f32.mrf.mxu1 }
 0x21d   :  { %v1810_v62 = vadd.f32 %v1809_v45, %v1690_v48  ;;  %v2005_v39 = vadd.f32 %v1996_v1, %v1982_v0  ;;  %v1984_v41 = vadd.f32 %v1935_v57, %v1808_v3  ;;  %v2004_v45 = vadd.f32 %v1992_v12, %v1981_v9 }
 0x21e   :  { %v1727_v50 = vpop.f32.mrf.mxu0  ;;  %v1937_v2 = vpop.f32.mrf.mxu1 }
 0x21f   :  { %v1985_v22 = vadd.f32 %v1937_v2, %v1810_v62  ;;  %v2013_v46 = vcombine.low %v2004_v45, %v2005_v39  ;;  %v2035_v55 = vcombine.high %v2004_v45, %v2005_v39  ;;  %v2007_v47 = vadd.f32 %v1992_v12, %v1984_v41 }
 0x220   :  { %v3818_v52 = vpop.f32.mrf.mxu0 }
 0x221   :  { %v2008_v51 = vadd.f32 %v1996_v1, %v1985_v22  ;;  %v2020_v61 = vrot.slane %v2013_v46, %v5181_v59 }
 0x222   :  { %v1730_v54 = vpop.f32.mrf.mxu0 }
 0x223   :  { %v2062_v57 = vcombine.low %v2007_v47, %v2008_v51  ;;  %v2085_v5 = vcombine.high %v2007_v47, %v2008_v51 }
 0x224   :  { %v3819_v58 = vpop.f32.mrf.mxu0 }
 0x225   :  { %v2069_v39 = vrot.slane %v2062_v57, %v5181_v59  ;;  %v2093_v51 = vrot.slane %v2085_v5, %v5181_v59 }
 0x226   :  { %v1846_v63 = vpop.f32.mrf.mxu0 }
 0x227   :  { %v1847_v48 = vadd.f32 %v1846_v63, %v1727_v50  ;;  %v2159_v50 = vld [vmem:[%s5622_s14] sm:$0x7] }
 0x228   :  { %v3826_v4 = vpop.f32.mrf.mxu0  ;;  %v5199_v57 = vrot.slane %v2159_v50, %v1995_v56  ;;  %v5204_v56 = vrot.slane %v2159_v50, %v1999_v17 }
 0x229   :  { %v2043_v4 = vrot.slane %v2035_v55, %v5181_v59 }
 0x22a   :  { %v1849_v25 = vpop.f32.mrf.mxu0 }
 0x22b   :  { %v1850_v62 = vadd.f32 %v1849_v25, %v1730_v54  ;;  %v5190_v25 = vrot.slane %v2159_v50, %v1991_v60 }
 0x22c   :  { %v3827_v43 = vpop.f32.mrf.mxu0 }
 0x22e   :  { %v1974_v42 = vpop.f32.mrf.mxu0 }
 0x22f   :  { %v1983_v52 = vadd.f32 %v1974_v42, %v1847_v48 }
 0x230   :  { %v3834_v58 = vpop.f32.mrf.mxu0 }
 0x231   :  { %v2006_v0 = vadd.f32 %v2000_v49, %v1983_v52 }
 0x232   :  { %v1977_v2 = vpop.f32.mrf.mxu0 }
 0x233   :  { %v2027_v63 = vrot.slane %v2006_v0, %v5181_v59  ;;  %v2036_v1 = vcombine.high %v2006_v0, %v2006_v0  ;;  %v1986_v3 = vadd.f32 %v1977_v2, %v1850_v62 }
 0x234   :  { %v3835_v7 = vpop.f32.mrf.mxu0 }
 0x235   :  { %v2028_v9 = vcombine.low %v2020_v61, %v2027_v63  ;;  %v2031_v12 = vcombine.high %v2020_v61, %v2027_v63  ;;  %v2050_v54 = vrot.slane %v2036_v1, %v5181_v59  ;;  %v2009_v22 = vadd.f32 %v2000_v49, %v1986_v3 }
 0x237   :  { %2030 = vst [vmem:[#allocation2] sm:$0x3f] %v2028_v9  ;;  %2034 = vst [vmem:[#allocation2 + $0x6] sm:$0x3f] %v2031_v12  ;;  %v2051_v41 = vcombine.low %v2043_v4, %v2050_v54  ;;  %v2055_v43 = vcombine.high %v2043_v4, %v2050_v54  ;;  %v2076_v44 = vrot.slane %v2009_v22, %v5181_v59 }
 0x238   :  { %v2086_v45 = vcombine.high %v2009_v22, %v2009_v22  ;;  %v2338_v48 = vpop.f32.mrf.mxu1 }
 0x239   :  { %2054 = vst [vmem:[#allocation2 + $0xc] sm:$0x3f] %v2051_v41  ;;  %2058 = vst [vmem:[#allocation2 + $0x12] sm:$0x3f] %v2055_v43  ;;  %v2077_v42 = vcombine.low %v2069_v39, %v2076_v44  ;;  %v2081_v46 = vcombine.high %v2069_v39, %v2076_v44  ;;  %v2339_v47 = vadd.f32 %v2338_v48, %v5190_v25 }
 0x23a   :  { %v2100_v49 = vrot.slane %v2086_v45, %v5181_v59  ;;  %v2340_v60 = vpop.f32.mrf.mxu1 }
 0x23b   :  { %2080 = vst [vmem:[#allocation2 + $0x18] sm:$0x3f] %v2077_v42  ;;  %2084 = vst [vmem:[#allocation2 + $0x1e] sm:$0x3f] %v2081_v46  ;;  %v2341_v1 = vadd.f32 %v2340_v60, %v5199_v57 }
 0x23c   :  { %v2101_v52 = vcombine.low %v2093_v51, %v2100_v49  ;;  %v2105_v55 = vcombine.high %v2093_v51, %v2100_v49  ;;  %v2342_v58 = vpop.f32.mrf.mxu1 }
 0x23e   :  { %2104 = vst [vmem:[#allocation2 + $0x24] sm:$0x3f] %v2101_v52  ;;  %2108 = vst [vmem:[#allocation2 + $0x2a] sm:$0x3f] %v2105_v55  ;;  %v2126_v62 = vld [vmem:[#allocation2] sm:$0x3f]  ;;  %v2343_v0 = vpop.f32.mrf.mxu1 }
 0x23f   :  { %v2385_v2 = vadd.f32 %v2339_v47, %v2126_v62  ;;  %v2393_v63 = vrot.slane %v2126_v62, 2  ;;  %v2403_v48 = vrot.slane %v2126_v62, 4  ;;  %v2411_v58 = vld [vmem:[#allocation2 + $0x6] sm:$0x3f] }
 0x241   :  { %v3513_v61 = vmul.f32 -1.442695, %v2385_v2  ;;  %v2395_v3 = vadd.f32 %v2393_v63, %v2341_v1 }
 0x243   :  { %4217 = vpow2.f32 %v3513_v61  ;;  %v3514_v4 = vmul.f32 -1.442695, %v2395_v3 }
 0x245   :  { %4219 = vpow2.f32 %v3514_v4 }
 0x24e   :  { %v2379_v5 = vpop.f32.mrf.mxu0 }
 0x24f   :  { %v2380_v43 = vadd.f32 %v2379_v5, %v5204_v56 }
 0x250   :  { %v4218_v7 = vpop.eup %4217  ;;  %v3854_v9 = vpop.f32.mrf.mxu0 }
 0x251   :  { %v2389_v12 = vadd.f32 1.0, %v4218_v7  ;;  %v2502_v7 = vrot.slane %v2411_v58, 2 }
 0x252   :  { %v2382_v54 = vpop.f32.mrf.mxu0  ;;  %v4220_v39 = vpop.eup %4219 }
 0x253   :  { %4221 = vrcp.f32 %v2389_v12  ;;  %v2399_v41 = vadd.f32 1.0, %v4220_v39 }
 0x254   :  { %v3855_v22 = vpop.f32.mrf.mxu0 }
 0x255   :  { %4223 = vrcp.f32 %v2399_v41 }
 0x260   :  { %v4222_v44 = vpop.eup %4221 }
 0x261   :  { %v2402_v45 = vmul.f32 %v4222_v44, %v2380_v43 }
 0x262   :  { %v4224_v42 = vpop.eup %4223 }
 0x263   :  { %v2405_v51 = vadd.f32 %v2403_v48, %v2402_v45  ;;  %v2407_v46 = vsub.f32 1.0, %v4224_v42  ;;  %v2409_v52 = vmul.f32 0.0, %v4224_v42  ;;  %v2512_v48 = vrot.slane %v2411_v58, 4 }
 0x265   :  { %4225 = vtanh.f32 %v2405_v51 }
 0x272   :  { %v4226_v49 = vpop.eup %4225 }
 0x273   :  { %v2408_v60 = vmul.f32 %v4226_v49, %v2407_v46 }
 0x275   :  { %v5207_v55 = vadd.f32 %v2409_v52, %v2408_v60 }
 0x277   :  { %v2412_v53 = vpack.c.bf16 %v5207_v55, %v5207_v55 }
 0x279   :  { %2446 = vmatmul.mubr.bf16.vlgmr.msra.gmra.mxu1 %v2412_v53  ;;  %3873 = vmatmul.mubr.bf16.vlgmr.msra.gmra.mxu0 %v2412_v53 }
 0x27a   :  { %2523 = vmatpush1.bf16.msra.mxu1 %v4951_v6  ;;  %3877 = vmatpush3.bf16.msra.mxu0 %v5053_v27 }
 0x27b   :  { %2524 = vmatprep.subr.bf16.mxu1 %v4957_v8  ;;  %3878 = vmatprep.subr.bf16.mxu0 %v4343_v32 }
 0x27c   :  { %2554 = vmatprep.mubr.bf16.mxu1 %v4345_v40  ;;  %3892 = vmatprep.mubr.msk.bf16.mxu0 %vm4344_vm1, %v4343_v32 }
 0x27e   :  { %2525 = vmatpush1.bf16.msra.mxu1 %v4970_v10  ;;  %3879 = vmatpush3.bf16.msra.mxu0 %v5073_v30 }
 0x27f   :  { %2526 = vmatprep.subr.bf16.mxu1 %v4976_v11  ;;  %3880 = vmatprep.subr.bf16.mxu0 %v4343_v32 }
 0x282   :  { %2527 = vmatpush1.bf16.msra.mxu1 %v4987_v13  ;;  %3881 = vmatpush3.bf16.msra.mxu0 %v5089_v33 }
 0x283   :  { %2528 = vmatprep.subr.bf16.mxu1 %v4994_v15  ;;  %3882 = vmatprep.subr.bf16.mxu0 %v4343_v32 }
 0x286   :  { %2529 = vmatpush1.bf16.msra.mxu1 %v5006_v19  ;;  %3883 = vmatpush3.bf16.msra.mxu0 %v5098_v34 }
 0x287   :  { %2530 = vmatprep.subr.bf16.mxu1 %v5012_v20  ;;  %3884 = vmatprep.subr.bf16.mxu0 %v4343_v32 }
 0x28a   :  { %2531 = vmatpush1.bf16.msra.mxu1 %v5022_v23  ;;  %3885 = vmatpush3.bf16.msra.mxu0 %v5109_v35 }
 0x28b   :  { %2532 = vmatprep.subr.bf16.mxu1 %v5030_v24  ;;  %3886 = vmatprep.subr.bf16.mxu0 %v4343_v32 }
 0x28e   :  { %2533 = vmatpush1.bf16.msra.mxu1 %v5042_v18  ;;  %3887 = vmatpush3.bf16.msra.mxu0 %v5118_v36 }
 0x28f   :  { %2534 = vmatprep.subr.bf16.mxu1 %v5048_v26  ;;  %3888 = vmatprep.subr.bf16.mxu0 %v4343_v32 }
 0x292   :  { %2535 = vmatpush1.bf16.msra.mxu1 %v5060_v28  ;;  %3889 = vmatpush3.bf16.msra.mxu0 %v5127_v37 }
 0x293   :  { %2536 = vmatprep.subr.bf16.mxu1 %v5067_v29  ;;  %3890 = vmatprep.subr.bf16.mxu0 %v4343_v32 }
 0x296   :  { %2537 = vmatpush1.bf16.msra.mxu1 %v5082_v31  ;;  %3891 = vmatpush3.bf16.msra.mxu0 %v5136_v38 }
 0x297   :  { %2631 = vmatprep.subr.bf16.mxu1 %v4936_v21  ;;  %3896 = vmatprep.subr.bf16.mxu0 %v4343_v32 }
 0x339   :  { %v2447_v17 = vpop.f32.mrf.mxu1  ;;  %v2488_v50 = vpop.f32.mrf.mxu0 }
 0x33a   :  { %v2448_v47 = vadd.f32 %v2447_v17, %v5190_v25  ;;  %v2489_v43 = vadd.f32 %v2488_v50, %v5204_v56 }
 0x33b   :  { %v2449_v62 = vpop.f32.mrf.mxu1  ;;  %v3874_v0 = vpop.f32.mrf.mxu0 }
 0x33c   :  { %v2494_v2 = vadd.f32 %v2448_v47, %v2411_v58  ;;  %v2450_v3 = vadd.f32 %v2449_v62, %v5199_v57  ;;  %v2520_v58 = vld [vmem:[#allocation2 + $0xc] sm:$0x3f] }
 0x33d   :  { %v2451_v61 = vpop.f32.mrf.mxu1  ;;  %v2491_v63 = vpop.f32.mrf.mxu0 }
 0x33e   :  { %v3515_v1 = vmul.f32 -1.442695, %v2494_v2  ;;  %v2504_v9 = vadd.f32 %v2502_v7, %v2450_v3  ;;  %v2611_v7 = vrot.slane %v2520_v58, 2 }
 0x33f   :  { %v2452_v4 = vpop.f32.mrf.mxu1  ;;  %v3875_v5 = vpop.f32.mrf.mxu0 }
 0x340   :  { %4227 = vpow2.f32 %v3515_v1  ;;  %v3516_v12 = vmul.f32 -1.442695, %v2504_v9 }
 0x342   :  { %4229 = vpow2.f32 %v3516_v12 }
 0x34d   :  { %v4228_v54 = vpop.eup %4227 }
 0x34e   :  { %v2498_v22 = vadd.f32 1.0, %v4228_v54 }
 0x34f   :  { %v4230_v39 = vpop.eup %4229 }
 0x350   :  { %4231 = vrcp.f32 %v2498_v22  ;;  %v2508_v41 = vadd.f32 1.0, %v4230_v39 }
 0x352   :  { %4233 = vrcp.f32 %v2508_v41 }
 0x35d   :  { %v4232_v44 = vpop.eup %4231 }
 0x35e   :  { %v2511_v45 = vmul.f32 %v4232_v44, %v2489_v43 }
 0x35f   :  { %v4234_v42 = vpop.eup %4233 }
 0x360   :  { %v2514_v51 = vadd.f32 %v2512_v48, %v2511_v45  ;;  %v2516_v46 = vsub.f32 1.0, %v4234_v42  ;;  %v2518_v52 = vmul.f32 %v4234_v42, %v5207_v55  ;;  %v2621_v48 = vrot.slane %v2520_v58, 4 }
 0x362   :  { %4235 = vtanh.f32 %v2514_v51 }
 0x36f   :  { %v4236_v49 = vpop.eup %4235 }
 0x370   :  { %v2517_v60 = vmul.f32 %v4236_v49, %v2516_v46 }
 0x372   :  { %v5250_v53 = vadd.f32 %v2518_v52, %v2517_v60 }
 0x374   :  { %v2521_v17 = vpack.c.bf16 %v5250_v53, %v5250_v53 }
 0x376   :  { %2555 = vmatmul.mubr.bf16.vlgmr.msra.gmra.mxu1 %v2521_v17  ;;  %3893 = vmatmul.mubr.bf16.vlgmr.msra.gmra.mxu0 %v2521_v17 }
 0x377   :  { %2632 = vmatpush1.bf16.msra.mxu1 %v4951_v6  ;;  %3897 = vmatpush3.bf16.msra.mxu0 %v5053_v27 }
 0x378   :  { %2633 = vmatprep.subr.bf16.mxu1 %v4957_v8  ;;  %3898 = vmatprep.subr.bf16.mxu0 %v4343_v32 }
 0x379   :  { %2663 = vmatprep.mubr.bf16.mxu1 %v4345_v40  ;;  %3912 = vmatprep.mubr.msk.bf16.mxu0 %vm4344_vm1, %v4343_v32 }
 0x37b   :  { %2634 = vmatpush1.bf16.msra.mxu1 %v4970_v10  ;;  %3899 = vmatpush3.bf16.msra.mxu0 %v5073_v30 }
 0x37c   :  { %2635 = vmatprep.subr.bf16.mxu1 %v4976_v11  ;;  %3900 = vmatprep.subr.bf16.mxu0 %v4343_v32 }
 0x37f   :  { %2636 = vmatpush1.bf16.msra.mxu1 %v4987_v13  ;;  %3901 = vmatpush3.bf16.msra.mxu0 %v5089_v33 }
 0x380   :  { %2637 = vmatprep.subr.bf16.mxu1 %v4994_v15  ;;  %3902 = vmatprep.subr.bf16.mxu0 %v4343_v32 }
 0x383   :  { %2638 = vmatpush1.bf16.msra.mxu1 %v5006_v19  ;;  %3903 = vmatpush3.bf16.msra.mxu0 %v5098_v34 }
 0x384   :  { %2639 = vmatprep.subr.bf16.mxu1 %v5012_v20  ;;  %3904 = vmatprep.subr.bf16.mxu0 %v4343_v32 }
 0x387   :  { %2640 = vmatpush1.bf16.msra.mxu1 %v5022_v23  ;;  %3905 = vmatpush3.bf16.msra.mxu0 %v5109_v35 }
 0x388   :  { %2641 = vmatprep.subr.bf16.mxu1 %v5030_v24  ;;  %3906 = vmatprep.subr.bf16.mxu0 %v4343_v32 }
 0x38b   :  { %2642 = vmatpush1.bf16.msra.mxu1 %v5042_v18  ;;  %3907 = vmatpush3.bf16.msra.mxu0 %v5118_v36 }
 0x38c   :  { %2643 = vmatprep.subr.bf16.mxu1 %v5048_v26  ;;  %3908 = vmatprep.subr.bf16.mxu0 %v4343_v32 }
 0x38f   :  { %2644 = vmatpush1.bf16.msra.mxu1 %v5060_v28  ;;  %3909 = vmatpush3.bf16.msra.mxu0 %v5127_v37 }
 0x390   :  { %2645 = vmatprep.subr.bf16.mxu1 %v5067_v29  ;;  %3910 = vmatprep.subr.bf16.mxu0 %v4343_v32 }
 0x393   :  { %2646 = vmatpush1.bf16.msra.mxu1 %v5082_v31  ;;  %3911 = vmatpush3.bf16.msra.mxu0 %v5136_v38 }
 0x394   :  { %2740 = vmatprep.subr.bf16.mxu1 %v4936_v21  ;;  %3916 = vmatprep.subr.bf16.mxu0 %v4343_v32 }
 0x436   :  { %v2556_v55 = vpop.f32.mrf.mxu1  ;;  %v2597_v50 = vpop.f32.mrf.mxu0 }
 0x437   :  { %v2557_v47 = vadd.f32 %v2556_v55, %v5190_v25  ;;  %v2598_v43 = vadd.f32 %v2597_v50, %v5204_v56 }
 0x438   :  { %v2558_v62 = vpop.f32.mrf.mxu1  ;;  %v3894_v0 = vpop.f32.mrf.mxu0 }
 0x439   :  { %v2603_v2 = vadd.f32 %v2557_v47, %v2520_v58  ;;  %v2559_v3 = vadd.f32 %v2558_v62, %v5199_v57  ;;  %v2629_v58 = vld [vmem:[#allocation2 + $0x12] sm:$0x3f] }
 0x43a   :  { %v2560_v61 = vpop.f32.mrf.mxu1  ;;  %v2600_v63 = vpop.f32.mrf.mxu0 }
 0x43b   :  { %v3517_v1 = vmul.f32 -1.442695, %v2603_v2  ;;  %v2613_v9 = vadd.f32 %v2611_v7, %v2559_v3  ;;  %v2720_v7 = vrot.slane %v2629_v58, 2 }
 0x43c   :  { %v2561_v4 = vpop.f32.mrf.mxu1  ;;  %v3895_v5 = vpop.f32.mrf.mxu0 }
 0x43d   :  { %4237 = vpow2.f32 %v3517_v1  ;;  %v3518_v12 = vmul.f32 -1.442695, %v2613_v9 }
 0x43f   :  { %4239 = vpow2.f32 %v3518_v12 }
 0x44a   :  { %v4238_v54 = vpop.eup %4237 }
 0x44b   :  { %v2607_v22 = vadd.f32 1.0, %v4238_v54 }
 0x44c   :  { %v4240_v39 = vpop.eup %4239 }
 0x44d   :  { %4241 = vrcp.f32 %v2607_v22  ;;  %v2617_v41 = vadd.f32 1.0, %v4240_v39 }
 0x44f   :  { %4243 = vrcp.f32 %v2617_v41 }
 0x45a   :  { %v4242_v44 = vpop.eup %4241 }
 0x45b   :  { %v2620_v45 = vmul.f32 %v4242_v44, %v2598_v43 }
 0x45c   :  { %v4244_v42 = vpop.eup %4243 }
 0x45d   :  { %v2623_v51 = vadd.f32 %v2621_v48, %v2620_v45  ;;  %v2625_v46 = vsub.f32 1.0, %v4244_v42  ;;  %v2627_v52 = vmul.f32 %v4244_v42, %v5250_v53  ;;  %v2730_v45 = vrot.slane %v2629_v58, 4 }
 0x45f   :  { %4245 = vtanh.f32 %v2623_v51 }
 0x46c   :  { %v4246_v49 = vpop.eup %4245 }
 0x46d   :  { %v2626_v60 = vmul.f32 %v4246_v49, %v2625_v46 }
 0x46f   :  { %v5293_v17 = vadd.f32 %v2627_v52, %v2626_v60 }
 0x471   :  { %v2630_v55 = vpack.c.bf16 %v5293_v17, %v5293_v17 }
 0x473   :  { %2664 = vmatmul.mubr.bf16.vlgmr.msra.gmra.mxu1 %v2630_v55  ;;  %3913 = vmatmul.mubr.bf16.vlgmr.msra.gmra.mxu0 %v2630_v55 }
 0x474   :  { %2741 = vmatpush1.bf16.msra.mxu1 %v4951_v6  ;;  %3917 = vmatpush3.bf16.msra.mxu0 %v5053_v27 }
 0x475   :  { %2742 = vmatprep.subr.bf16.mxu1 %v4957_v8  ;;  %3918 = vmatprep.subr.bf16.mxu0 %v4343_v32 }
 0x476   :  { %2772 = vmatprep.mubr.bf16.mxu1 %v4345_v40  ;;  %3932 = vmatprep.mubr.msk.bf16.mxu0 %vm4344_vm1, %v4343_v32 }
 0x478   :  { %2743 = vmatpush1.bf16.msra.mxu1 %v4970_v10  ;;  %3919 = vmatpush3.bf16.msra.mxu0 %v5073_v30 }
 0x479   :  { %2744 = vmatprep.subr.bf16.mxu1 %v4976_v11  ;;  %3920 = vmatprep.subr.bf16.mxu0 %v4343_v32 }
 0x47c   :  { %2745 = vmatpush1.bf16.msra.mxu1 %v4987_v13  ;;  %3921 = vmatpush3.bf16.msra.mxu0 %v5089_v33 }
 0x47d   :  { %2746 = vmatprep.subr.bf16.mxu1 %v4994_v15  ;;  %3922 = vmatprep.subr.bf16.mxu0 %v4343_v32 }
 0x480   :  { %2747 = vmatpush1.bf16.msra.mxu1 %v5006_v19  ;;  %3923 = vmatpush3.bf16.msra.mxu0 %v5098_v34 }
 0x481   :  { %2748 = vmatprep.subr.bf16.mxu1 %v5012_v20  ;;  %3924 = vmatprep.subr.bf16.mxu0 %v4343_v32 }
 0x484   :  { %2749 = vmatpush1.bf16.msra.mxu1 %v5022_v23  ;;  %3925 = vmatpush3.bf16.msra.mxu0 %v5109_v35 }
 0x485   :  { %2750 = vmatprep.subr.bf16.mxu1 %v5030_v24  ;;  %3926 = vmatprep.subr.bf16.mxu0 %v4343_v32 }
 0x488   :  { %2751 = vmatpush1.bf16.msra.mxu1 %v5042_v18  ;;  %3927 = vmatpush3.bf16.msra.mxu0 %v5118_v36 }
 0x489   :  { %2752 = vmatprep.subr.bf16.mxu1 %v5048_v26  ;;  %3928 = vmatprep.subr.bf16.mxu0 %v4343_v32 }
 0x48c   :  { %2753 = vmatpush1.bf16.msra.mxu1 %v5060_v28  ;;  %3929 = vmatpush3.bf16.msra.mxu0 %v5127_v37 }
 0x48d   :  { %2754 = vmatprep.subr.bf16.mxu1 %v5067_v29  ;;  %3930 = vmatprep.subr.bf16.mxu0 %v4343_v32 }
 0x490   :  { %2755 = vmatpush1.bf16.msra.mxu1 %v5082_v31  ;;  %3931 = vmatpush3.bf16.msra.mxu0 %v5136_v38 }
 0x491   :  { %2849 = vmatprep.subr.bf16.mxu1 %v4936_v21  ;;  %3936 = vmatprep.subr.bf16.mxu0 %v4343_v32 }
 0x533   :  { %v2665_v53 = vpop.f32.mrf.mxu1  ;;  %v2706_v50 = vpop.f32.mrf.mxu0 }
 0x534   :  { %v2666_v47 = vadd.f32 %v2665_v53, %v5190_v25  ;;  %v2707_v41 = vadd.f32 %v2706_v50, %v5204_v56 }
 0x535   :  { %v2667_v62 = vpop.f32.mrf.mxu1  ;;  %v3914_v0 = vpop.f32.mrf.mxu0 }
 0x536   :  { %v2712_v2 = vadd.f32 %v2666_v47, %v2629_v58  ;;  %v2668_v3 = vadd.f32 %v2667_v62, %v5199_v57 }
 0x537   :  { %v2669_v61 = vpop.f32.mrf.mxu1  ;;  %v2709_v63 = vpop.f32.mrf.mxu0 }
 0x538   :  { %v3519_v1 = vmul.f32 -1.442695, %v2712_v2  ;;  %v2722_v21 = vadd.f32 %v2720_v7, %v2668_v3 }
 0x539   :  { %v2670_v4 = vpop.f32.mrf.mxu1  ;;  %v3915_v5 = vpop.f32.mrf.mxu0 }
 0x53a   :  { %4247 = vpow2.f32 %v3519_v1  ;;  %v3520_v9 = vmul.f32 -1.442695, %v2722_v21 }
 0x53c   :  { %4249 = vpow2.f32 %v3520_v9 }
 0x547   :  { %v4248_v12 = vpop.eup %4247 }
 0x548   :  { %v2716_v54 = vadd.f32 1.0, %v4248_v12 }
 0x549   :  { %v4250_v22 = vpop.eup %4249 }
 0x54a   :  { %4251 = vrcp.f32 %v2716_v54  ;;  %v2726_v39 = vadd.f32 1.0, %v4250_v22  ;;  %v5391_v22 = vld [vmem:[%s5621_s13 + $0xa8] ss:$12 sps:$4 sm:$0xff]  }
 0x54c   :  { %4253 = vrcp.f32 %v2726_v39  ;;  %v5398_v39 = vld [vmem:[%s5621_s13 + $0x94] ss:$12 sps:$4 sm:$0xff]  }
 0x557   :  { %v4252_v43 = vpop.eup %4251 }
 0x558   :  { %v2729_v44 = vmul.f32 %v4252_v43, %v2707_v41  ;;  %v5408_v41 = vld [vmem:[%s5621_s13 + $0x90] ss:$12 sps:$4 sm:$0xff]   ;;  %v5422_v43 = vld [vmem:[%s5621_s13 + $0x78] ss:$12 sps:$4 sm:$0xff]  }
 0x559   :  { %v4254_v51 = vpop.eup %4253 }
 0x55a   :  { %v2732_v48 = vadd.f32 %v2730_v45, %v2729_v44  ;;  %v2734_v42 = vsub.f32 1.0, %v4254_v51  ;;  %v2736_v60 = vmul.f32 %v4254_v51, %v5293_v17  ;;  %v5436_v44 = vld [vmem:[%s5621_s13 + $0x60] ss:$12 sps:$4 sm:$0xff]   ;;  %v5450_v45 = vld [vmem:[%s5621_s13 + $0x48] ss:$12 sps:$4 sm:$0xff]  }
 0x55b   :  { %v5478_v51 = vld [vmem:[%s5621_s13 + $0x18] ss:$12 sps:$4 sm:$0xff]  }
 0x55c   :  { %4255 = vtanh.f32 %v2732_v48  ;;  %v5464_v48 = vld [vmem:[%s5621_s13 + $0x30] ss:$12 sps:$4 sm:$0xff]  }
 0x569   :  { %v4256_v46 = vpop.eup %4255 }
 0x56a   :  { %v2735_v49 = vmul.f32 %v4256_v46, %v2734_v42 }
 0x56c   :  { %v5336_v52 = vadd.f32 %v2736_v60, %v2735_v49  ;;  %v2847_v49 = vld [vmem:[#allocation2 + $0x1e] sm:$0x3f] }
 0x56e   :  { %v2739_v55 = vpack.c.bf16 %v5336_v52, %v5336_v52 }
 0x570   :  { %2773 = vmatmul.mubr.bf16.vlgmr.msra.gmra.mxu1 %v2739_v55  ;;  %3933 = vmatmul.mubr.bf16.vlgmr.msra.gmra.mxu0 %v2739_v55 }
 0x571   :  { %2850 = vmatpush1.bf16.msra.mxu1 %v4951_v6  ;;  %3937 = vmatpush3.bf16.msra.mxu0 %v5053_v27  ;;  %v5376_v6 = vld [vmem:[%s5621_s13 + $0xac] ss:$12 sps:$4 sm:$0xff]  }
 0x572   :  { %2851 = vmatprep.subr.bf16.mxu1 %v4957_v8  ;;  %3938 = vmatprep.subr.bf16.mxu0 %v4343_v32 }
 0x573   :  { %2881 = vmatprep.mubr.bf16.mxu1 %v4345_v40  ;;  %3952 = vmatprep.mubr.msk.bf16.mxu0 %vm4344_vm1, %v4343_v32 }
 0x575   :  { %2852 = vmatpush1.bf16.msra.mxu1 %v4970_v10  ;;  %3939 = vmatpush3.bf16.msra.mxu0 %v5073_v30 }
 0x576   :  { %2853 = vmatprep.subr.bf16.mxu1 %v4976_v11  ;;  %3940 = vmatprep.subr.bf16.mxu0 %v4343_v32 }
 0x579   :  { %2854 = vmatpush1.bf16.msra.mxu1 %v4987_v13  ;;  %3941 = vmatpush3.bf16.msra.mxu0 %v5089_v33  ;;  %v2738_v13 = vld [vmem:[#allocation2 + $0x18] sm:$0x3f] }
 0x57a   :  { %2855 = vmatprep.subr.bf16.mxu1 %v4994_v15  ;;  %3942 = vmatprep.subr.bf16.mxu0 %v4343_v32  ;;  %v2829_v17 = vrot.slane %v2738_v13, 2  ;;  %v2839_v1 = vrot.slane %v2738_v13, 4 }
 0x57d   :  { %2856 = vmatpush1.bf16.msra.mxu1 %v5006_v19  ;;  %3943 = vmatpush3.bf16.msra.mxu0 %v5098_v34 }
 0x57e   :  { %2857 = vmatprep.subr.bf16.mxu1 %v5012_v20  ;;  %3944 = vmatprep.subr.bf16.mxu0 %v4343_v32 }
 0x581   :  { %2858 = vmatpush1.bf16.msra.mxu1 %v5022_v23  ;;  %3945 = vmatpush3.bf16.msra.mxu0 %v5109_v35 }
 0x582   :  { %2859 = vmatprep.subr.bf16.mxu1 %v5030_v24  ;;  %3946 = vmatprep.subr.bf16.mxu0 %v4343_v32 }
 0x585   :  { %2860 = vmatpush1.bf16.msra.mxu1 %v5042_v18  ;;  %3947 = vmatpush3.bf16.msra.mxu0 %v5118_v36 }
 0x586   :  { %2861 = vmatprep.subr.bf16.mxu1 %v5048_v26  ;;  %3948 = vmatprep.subr.bf16.mxu0 %v4343_v32 }
 0x589   :  { %2862 = vmatpush1.bf16.msra.mxu1 %v5060_v28  ;;  %3949 = vmatpush3.bf16.msra.mxu0 %v5127_v37 }
 0x58a   :  { %2863 = vmatprep.subr.bf16.mxu1 %v5067_v29  ;;  %3950 = vmatprep.subr.bf16.mxu0 %v4343_v32 }
 0x58d   :  { %2864 = vmatpush1.bf16.msra.mxu1 %v5082_v31  ;;  %3951 = vmatpush3.bf16.msra.mxu0 %v5136_v38 }
 0x58e   :  { %2958 = vmatprep.subr.bf16.mxu1 %v5376_v6  ;;  %3956 = vmatprep.subr.bf16.mxu0 %v4343_v32 }
 0x630   :  { %v2774_v8 = vpop.f32.mrf.mxu1  ;;  %v2815_v10 = vpop.f32.mrf.mxu0 }
 0x631   :  { %v2775_v11 = vadd.f32 %v2774_v8, %v5190_v25  ;;  %v2816_v2 = vadd.f32 %v2815_v10, %v5204_v56 }
 0x632   :  { %v2776_v15 = vpop.f32.mrf.mxu1  ;;  %v3934_v19 = vpop.f32.mrf.mxu0 }
 0x633   :  { %v2821_v20 = vadd.f32 %v2775_v11, %v2738_v13  ;;  %v2777_v26 = vadd.f32 %v2776_v15, %v5199_v57 }
 0x634   :  { %v2778_v23 = vpop.f32.mrf.mxu1  ;;  %v2818_v24 = vpop.f32.mrf.mxu0 }
 0x635   :  { %v3521_v18 = vmul.f32 -1.442695, %v2821_v20  ;;  %v2831_v53 = vadd.f32 %v2829_v17, %v2777_v26  ;;  %v2948_v17 = vrot.slane %v2847_v49, 4 }
 0x636   :  { %v2779_v28 = vpop.f32.mrf.mxu1  ;;  %v3935_v29 = vpop.f32.mrf.mxu0 }
 0x637   :  { %4257 = vpow2.f32 %v3521_v18  ;;  %v3522_v50 = vmul.f32 -1.442695, %v2831_v53 }
 0x639   :  { %4259 = vpow2.f32 %v3522_v50 }
 0x644   :  { %v4258_v47 = vpop.eup %4257 }
 0x645   :  { %v2825_v58 = vadd.f32 1.0, %v4258_v47 }
 0x646   :  { %v4260_v62 = vpop.eup %4259 }
 0x647   :  { %4261 = vrcp.f32 %v2825_v58  ;;  %v2835_v0 = vadd.f32 1.0, %v4260_v62 }
 0x649   :  { %4263 = vrcp.f32 %v2835_v0 }
 0x654   :  { %v4262_v61 = vpop.eup %4261 }
 0x655   :  { %v2838_v63 = vmul.f32 %v4262_v61, %v2816_v2 }
 0x656   :  { %v4264_v4 = vpop.eup %4263 }
 0x657   :  { %v2841_v3 = vadd.f32 %v2839_v1, %v2838_v63  ;;  %v2843_v5 = vsub.f32 1.0, %v4264_v4  ;;  %v2845_v9 = vmul.f32 %v4264_v4, %v5336_v52  ;;  %v4312_v63 = vld [vmem:[%s5621_s13 + $0xb0] ss:$12 sps:$4 sm:$0xff]   ;;  %v4313_v1 = vld [vmem:[%s5621_s13 + $0x98] ss:$12 sps:$4 sm:$0xff]  }
 0x658   :  { %v4316_v4 = vld [vmem:[%s5621_s13 + $0x50] ss:$12 sps:$4 sm:$0xff]  }
 0x659   :  { %4265 = vtanh.f32 %v2841_v3  ;;  %v4315_v3 = vld [vmem:[%s5621_s13 + $0x68] ss:$12 sps:$4 sm:$0xff]  }
 0x666   :  { %v4266_v7 = vpop.eup %4265 }
 0x667   :  { %v2844_v21 = vmul.f32 %v4266_v7, %v2843_v5  ;;  %v4317_v5 = vld [vmem:[%s5621_s13 + $0x38] ss:$12 sps:$4 sm:$0xff]   ;;  %v4318_v7 = vld [vmem:[%s5621_s13 + $0x20] ss:$12 sps:$4 sm:$0xff]  }
 0x669   :  { %v5384_v12 = vadd.f32 %v2845_v9, %v2844_v21  ;;  %v4319_v21 = vld [vmem:[%s5621_s13] ss:$12 sps:$4 sm:$0xff]   ;;  %v4320_v9 = vld [vmem:[%s5621_s13 + $0x8] ss:$12 sps:$4 sm:$0xff]  }
 0x66b   :  { %v2848_v54 = vpack.c.bf16 %v5384_v12, %v5384_v12 }
 0x66d   :  { %2882 = vmatmul.mubr.bf16.vlgmr.msra.gmra.mxu1 %v2848_v54  ;;  %3953 = vmatmul.mubr.bf16.vlgmr.msra.gmra.mxu0 %v2848_v54 }
 0x66e   :  { %2959 = vmatpush1.bf16.msra.mxu1 %v5391_v22  ;;  %3957 = vmatpush3.bf16.msra.mxu0 %v5053_v27  ;;  %v5415_v27 = vld [vmem:[%s5621_s13 + $0x7c] ss:$12 sps:$4 sm:$0xff]  }
 0x66f   :  { %2960 = vmatprep.subr.bf16.mxu1 %v5398_v39  ;;  %3958 = vmatprep.subr.bf16.mxu0 %v4343_v32 }
 0x670   :  { %2990 = vmatprep.mubr.bf16.mxu1 %v4345_v40  ;;  %3972 = vmatprep.mubr.msk.bf16.mxu0 %vm4344_vm1, %v4343_v32 }
 0x672   :  { %2961 = vmatpush1.bf16.msra.mxu1 %v5408_v41  ;;  %3959 = vmatpush3.bf16.msra.mxu0 %v5073_v30  ;;  %v5429_v30 = vld [vmem:[%s5621_s13 + $0x64] ss:$12 sps:$4 sm:$0xff]  }
 0x673   :  { %2962 = vmatprep.subr.bf16.mxu1 %v5415_v27  ;;  %3960 = vmatprep.subr.bf16.mxu0 %v4343_v32 }
 0x676   :  { %2963 = vmatpush1.bf16.msra.mxu1 %v5422_v43  ;;  %3961 = vmatpush3.bf16.msra.mxu0 %v5089_v33  ;;  %v5443_v33 = vld [vmem:[%s5621_s13 + $0x4c] ss:$12 sps:$4 sm:$0xff]  }
 0x677   :  { %2964 = vmatprep.subr.bf16.mxu1 %v5429_v30  ;;  %3962 = vmatprep.subr.bf16.mxu0 %v4343_v32 }
 0x67a   :  { %2965 = vmatpush1.bf16.msra.mxu1 %v5436_v44  ;;  %3963 = vmatpush3.bf16.msra.mxu0 %v5098_v34  ;;  %v5457_v34 = vld [vmem:[%s5621_s13 + $0x34] ss:$12 sps:$4 sm:$0xff]  }
 0x67b   :  { %2966 = vmatprep.subr.bf16.mxu1 %v5443_v33  ;;  %3964 = vmatprep.subr.bf16.mxu0 %v4343_v32 }
 0x67e   :  { %2967 = vmatpush1.bf16.msra.mxu1 %v5450_v45  ;;  %3965 = vmatpush3.bf16.msra.mxu0 %v5109_v35  ;;  %v5471_v35 = vld [vmem:[%s5621_s13 + $0x1c] ss:$12 sps:$4 sm:$0xff]  }
 0x67f   :  { %2968 = vmatprep.subr.bf16.mxu1 %v5457_v34  ;;  %3966 = vmatprep.subr.bf16.mxu0 %v4343_v32 }
 0x682   :  { %2969 = vmatpush1.bf16.msra.mxu1 %v5464_v48  ;;  %3967 = vmatpush3.bf16.msra.mxu0 %v5118_v36  ;;  %v5485_v36 = vld [vmem:[%s5621_s13 + $0x4] ss:$12 sps:$4 sm:$0xff]  }
 0x683   :  { %2970 = vmatprep.subr.bf16.mxu1 %v5471_v35  ;;  %3968 = vmatprep.subr.bf16.mxu0 %v4343_v32 }
 0x686   :  { %2971 = vmatpush1.bf16.msra.mxu1 %v5478_v51  ;;  %3969 = vmatpush3.bf16.msra.mxu0 %v5127_v37 }
 0x687   :  { %2972 = vmatprep.subr.bf16.mxu1 %v5485_v36  ;;  %3970 = vmatprep.subr.bf16.mxu0 %v4343_v32 }
 0x68a   :  { %2973 = vmatpush1.bf16.msra.mxu1 %v5082_v31  ;;  %3971 = vmatpush3.bf16.msra.mxu0 %v5136_v38  ;;  %v2938_v38 = vrot.slane %v2847_v49, 2 }
 0x68b   :  { %3067 = vmatprep.subr.bf16.mxu1 %v5376_v6  ;;  %3976 = vmatprep.subr.bf16.mxu0 %v4343_v32 }
 0x72d   :  { %v2883_v42 = vpop.f32.mrf.mxu1  ;;  %v2924_v46 = vpop.f32.mrf.mxu0 }
 0x72e   :  { %v2884_v37 = vadd.f32 %v2883_v42, %v5190_v25  ;;  %v2925_v26 = vadd.f32 %v2924_v46, %v5204_v56 }
 0x72f   :  { %v2885_v60 = vpop.f32.mrf.mxu1  ;;  %v3954_v52 = vpop.f32.mrf.mxu0 }
 0x730   :  { %v2930_v55 = vadd.f32 %v2884_v37, %v2847_v49  ;;  %v2886_v13 = vadd.f32 %v2885_v60, %v5199_v57 }
 0x731   :  { %v2887_v8 = vpop.f32.mrf.mxu1  ;;  %v2927_v10 = vpop.f32.mrf.mxu0 }
 0x732   :  { %v3523_v11 = vmul.f32 -1.442695, %v2930_v55  ;;  %v2940_v6 = vadd.f32 %v2938_v38, %v2886_v13 }
 0x733   :  { %v2888_v31 = vpop.f32.mrf.mxu1  ;;  %v3955_v15 = vpop.f32.mrf.mxu0 }
 0x734   :  { %4267 = vpow2.f32 %v3523_v11  ;;  %v3524_v19 = vmul.f32 -1.442695, %v2940_v6 }
 0x736   :  { %4269 = vpow2.f32 %v3524_v19 }
 0x741   :  { %v4268_v20 = vpop.eup %4267 }
 0x742   :  { %v2934_v23 = vadd.f32 1.0, %v4268_v20  ;;  %v4209_v20 = vld [vmem:[%s5623_s15 + $0x38] sm:$0xff]  }
 0x743   :  { %v4270_v24 = vpop.eup %4269 }
 0x744   :  { %4271 = vrcp.f32 %v2934_v23  ;;  %v2944_v18 = vadd.f32 1.0, %v4270_v24  ;;  %v4210_v23 = vld [vmem:[%s5623_s15 + $0x30] sm:$0xff]   ;;  %v4211_v24 = vld [vmem:[%s5623_s15 + $0x28] sm:$0xff]  }
 0x746   :  { %4273 = vrcp.f32 %v2944_v18  ;;  %v4212_v18 = vld [vmem:[%s5623_s15 + $0x20] sm:$0xff]  }
 0x751   :  { %v4272_v28 = vpop.eup %4271 }
 0x752   :  { %v2947_v29 = vmul.f32 %v4272_v28, %v2925_v26  ;;  %v4213_v26 = vld [vmem:[%s5623_s15 + $0x18] sm:$0xff]   ;;  %v4214_v28 = vld [vmem:[%s5623_s15 + $0x10] sm:$0xff]  }
 0x753   :  { %v4274_v50 = vpop.eup %4273 }
 0x754   :  { %v2950_v53 = vadd.f32 %v2948_v17, %v2947_v29  ;;  %v2952_v47 = vsub.f32 1.0, %v4274_v50  ;;  %v2954_v0 = vmul.f32 %v4274_v50, %v5384_v12  ;;  %v4215_v29 = vld [vmem:[%s5623_s15 + $0x8] sm:$0xff]   ;;  %v4216_v17 = vld [vmem:[%s5623_s15] sm:$0xff]  }
 0x756   :  { %4275 = vtanh.f32 %v2950_v53 }
 0x763   :  { %v4276_v58 = vpop.eup %4275 }
 0x764   :  { %v2953_v62 = vmul.f32 %v4276_v58, %v2952_v47  ;;  %v3065_v58 = vld [vmem:[#allocation2 + $0x2a] sm:$0x3f] }
 0x766   :  { %v5497_v2 = vadd.f32 %v2954_v0, %v2953_v62 }
 0x768   :  { %v2957_v61 = vpack.c.bf16 %v5497_v2, %v5497_v2 }
 0x76a   :  { %2991 = vmatmul.mubr.bf16.vlgmr.msra.gmra.mxu1 %v2957_v61  ;;  %3973 = vmatmul.mubr.bf16.vlgmr.msra.gmra.mxu0 %v2957_v61 }
 0x76b   :  { %3068 = vmatpush1.bf16.msra.mxu1 %v5391_v22  ;;  %3977 = vmatpush3.bf16.msra.mxu0 %v4312_v63 }
 0x76c   :  { %3069 = vmatprep.subr.bf16.mxu1 %v5398_v39  ;;  %3978 = vmatprep.subr.bf16.mxu0 %v4343_v32  ;;  %v2956_v39 = vld [vmem:[#allocation2 + $0x24] sm:$0x3f] }
 0x76d   :  { %3099 = vmatprep.mubr.bf16.mxu1 %v4345_v40  ;;  %3992 = vmatprep.mubr.msk.bf16.mxu0 %vm4344_vm1, %v4343_v32  ;;  %v4314_v40 = vld [vmem:[%s5621_s13 + $0x80] ss:$12 sps:$4 sm:$0xff]   ;;  %v3057_v8 = vrot.slane %v2956_v39, 4 }
 0x76f   :  { %3070 = vmatpush1.bf16.msra.mxu1 %v5408_v41  ;;  %3979 = vmatpush3.bf16.msra.mxu0 %v4313_v1 }
 0x770   :  { %3071 = vmatprep.subr.bf16.mxu1 %v5415_v27  ;;  %3980 = vmatprep.subr.bf16.mxu0 %v4343_v32 }
 0x773   :  { %3072 = vmatpush1.bf16.msra.mxu1 %v5422_v43  ;;  %3981 = vmatpush3.bf16.msra.mxu0 %v4314_v40 }
 0x774   :  { %3073 = vmatprep.subr.bf16.mxu1 %v5429_v30  ;;  %3982 = vmatprep.subr.bf16.mxu0 %v4343_v32 }
 0x777   :  { %3074 = vmatpush1.bf16.msra.mxu1 %v5436_v44  ;;  %3983 = vmatpush3.bf16.msra.mxu0 %v4315_v3 }
 0x778   :  { %3075 = vmatprep.subr.bf16.mxu1 %v5443_v33  ;;  %3984 = vmatprep.subr.bf16.mxu0 %v4343_v32 }
 0x77b   :  { %3076 = vmatpush1.bf16.msra.mxu1 %v5450_v45  ;;  %3985 = vmatpush3.bf16.msra.mxu0 %v4316_v4 }
 0x77c   :  { %3077 = vmatprep.subr.bf16.mxu1 %v5457_v34  ;;  %3986 = vmatprep.subr.bf16.mxu0 %v4343_v32 }
 0x77f   :  { %3078 = vmatpush1.bf16.msra.mxu1 %v5464_v48  ;;  %3987 = vmatpush3.bf16.msra.mxu0 %v4317_v5  ;;  %v3156_v5 = vrot.slane %v3065_v58, 2 }
 0x780   :  { %3079 = vmatprep.subr.bf16.mxu1 %v5471_v35  ;;  %3988 = vmatprep.subr.bf16.mxu0 %v4343_v32  ;;  %v3047_v35 = vrot.slane %v2956_v39, 2 }
 0x783   :  { %3080 = vmatpush1.bf16.msra.mxu1 %v5478_v51  ;;  %3989 = vmatpush3.bf16.msra.mxu0 %v4318_v7 }
 0x784   :  { %3081 = vmatprep.subr.bf16.mxu1 %v5485_v36  ;;  %3990 = vmatprep.subr.bf16.mxu0 %v4343_v32 }
 0x787   :  { %3082 = vmatpush1.bf16.msra.mxu1 %v4319_v21  ;;  %3991 = vmatpush3.bf16.msra.mxu0 %v4320_v9 }
 0x788   :  { %3996 = vmatprep.subr.bf16.mxu1 %v4343_v32 }
 0x82a   :  { %v2992_v12 = vpop.f32.mrf.mxu1  ;;  %v3033_v54 = vpop.f32.mrf.mxu0 }
 0x82b   :  { %v2993_v22 = vadd.f32 %v2992_v12, %v5190_v25  ;;  %v3034_v60 = vadd.f32 %v3033_v54, %v5204_v56  ;;  %v2115_v54 = vpop.permute.xlu0 %2114 }
 0x82c   :  { %v2994_v41 = vpop.f32.mrf.mxu1  ;;  %v3974_v27 = vpop.f32.mrf.mxu0 }
 0x82d   :  { %v3039_v43 = vadd.f32 %v2993_v22, %v2956_v39  ;;  %v2995_v45 = vadd.f32 %v2994_v41, %v5199_v57  ;;  %v3166_v27 = vrot.slane %v3065_v58, 4 }
 0x82e   :  { %v2996_v30 = vpop.f32.mrf.mxu1  ;;  %v3036_v44 = vpop.f32.mrf.mxu0 }
 0x82f   :  { %v3525_v33 = vmul.f32 -1.442695, %v3039_v43  ;;  %v3049_v51 = vadd.f32 %v3047_v35, %v2995_v45  ;;  %v2119_v43 = vpop.permute.xlu0 %2118  ;;  %v2121_v30 = vsel %vm1646_vm3, %v790_v16, %v2115_v54 }
 0x830   :  { %v2997_v34 = vpop.f32.mrf.mxu1  ;;  %v3975_v48 = vpop.f32.mrf.mxu0  ;;  %v2123_v44 = vsel %vm2122_vm4, %v2121_v30, %v2119_v43 }
 0x831   :  { %4277 = vpow2.f32 %v3525_v33  ;;  %v3526_v36 = vmul.f32 -1.442695, %v3049_v51  ;;  %v2125_v33 = vsel %vm2124_vm5, %v2123_v44, 0.0 }
 0x832   :  { %v3175_v45 = vcombine.high %v2125_v33, %v2125_v33 }
 0x833   :  { %4279 = vpow2.f32 %v3526_v36 }
 0x834   :  { %v3182_v48 = vrot.slane %v3175_v45, %v5181_v59 }
 0x83e   :  { %v4278_v42 = vpop.eup %4277 }
 0x83f   :  { %v3043_v46 = vadd.f32 1.0, %v4278_v42  ;;  %v3183_v42 = vcombine.high %v3182_v48, %v3182_v48 }
 0x840   :  { %v4280_v37 = vpop.eup %4279 }
 0x841   :  { %4281 = vrcp.f32 %v3043_v46  ;;  %v3053_v49 = vadd.f32 1.0, %v4280_v37 }
 0x843   :  { %4283 = vrcp.f32 %v3053_v49 }
 0x84e   :  { %v4282_v52 = vpop.eup %4281 }
 0x84f   :  { %v3056_v55 = vmul.f32 %v4282_v52, %v3034_v60 }
 0x850   :  { %v4284_v11 = vpop.eup %4283 }
 0x851   :  { %v3059_v10 = vadd.f32 %v3057_v8, %v3056_v55  ;;  %v3061_v13 = vsub.f32 1.0, %v4284_v11  ;;  %v3063_v38 = vmul.f32 %v4284_v11, %v5497_v2 }
 0x853   :  { %4285 = vtanh.f32 %v3059_v10 }
 0x860   :  { %v4286_v31 = vpop.eup %4285 }
 0x861   :  { %v3062_v15 = vmul.f32 %v4286_v31, %v3061_v13 }
 0x863   :  { %v5557_v6 = vadd.f32 %v3063_v38, %v3062_v15 }
 0x865   :  { %v3066_v19 = vpack.c.bf16 %v5557_v6, %v5557_v6 }
 0x867   :  { %3100 = vmatmul.mubr.bf16.vlgmr.msra.gmra.mxu1 %v3066_v19  ;;  %3993 = vmatmul.mubr.bf16.vlgmr.msra.gmra.mxu0 %v3066_v19 }
 0x868   :  { %4012 = vmatprep.mubr.msk.bf16.mxu1 %vm4344_vm1, %v4343_v32  ;;  %3997 = vmatpush3.bf16.msra.mxu1 %v4209_v20 }
 0x869   :  { %3998 = vmatprep.subr.bf16.mxu1 %v4343_v32 }
 0x86c   :  { %3999 = vmatpush3.bf16.msra.mxu1 %v4210_v23 }
 0x86d   :  { %4000 = vmatprep.subr.bf16.mxu1 %v4343_v32 }
 0x870   :  { %4001 = vmatpush3.bf16.msra.mxu1 %v4211_v24 }
 0x871   :  { %4002 = vmatprep.subr.bf16.mxu1 %v4343_v32 }
 0x874   :  { %4003 = vmatpush3.bf16.msra.mxu1 %v4212_v18 }
 0x875   :  { %4004 = vmatprep.subr.bf16.mxu1 %v4343_v32 }
 0x878   :  { %4005 = vmatpush3.bf16.msra.mxu1 %v4213_v26 }
 0x879   :  { %4006 = vmatprep.subr.bf16.mxu1 %v4343_v32 }
 0x87c   :  { %4007 = vmatpush3.bf16.msra.mxu1 %v4214_v28 }
 0x87d   :  { %4008 = vmatprep.subr.bf16.mxu1 %v4343_v32 }
 0x880   :  { %4009 = vmatpush3.bf16.msra.mxu1 %v4215_v29 }
 0x881   :  { %4010 = vmatprep.subr.bf16.mxu1 %v4343_v32 }
 0x884   :  { %4011 = vmatpush3.bf16.msra.mxu1 %v4216_v17 }
 0x927   :  { %v3101_v53 = vpop.f32.mrf.mxu1  ;;  %v3142_v50 = vpop.f32.mrf.mxu0 }
 0x928   :  { %v3102_v47 = vadd.f32 %v3101_v53, %v5190_v25  ;;  %v3143_v22 = vadd.f32 %v3142_v50, %v5204_v56 }
 0x929   :  { %v3103_v62 = vpop.f32.mrf.mxu1  ;;  %v3994_v0 = vpop.f32.mrf.mxu0 }
 0x92a   :  { %v3148_v2 = vadd.f32 %v3102_v47, %v3065_v58  ;;  %v3104_v40 = vadd.f32 %v3103_v62, %v5199_v57 }
 0x92b   :  { %v3105_v61 = vpop.f32.mrf.mxu1  ;;  %v3145_v63 = vpop.f32.mrf.mxu0 }
 0x92c   :  { %v3527_v1 = vmul.f32 -1.442695, %v3148_v2  ;;  %v3158_v7 = vadd.f32 %v3156_v5, %v3104_v40 }
 0x92d   :  { %v3106_v3 = vpop.f32.mrf.mxu1  ;;  %v3995_v4 = vpop.f32.mrf.mxu0 }
 0x92e   :  { %4287 = vpow2.f32 %v3527_v1  ;;  %v3528_v32 = vmul.f32 -1.442695, %v3158_v7 }
 0x930   :  { %4289 = vpow2.f32 %v3528_v32 }
 0x93b   :  { %v4288_v21 = vpop.eup %4287 }
 0x93c   :  { %v3152_v9 = vadd.f32 1.0, %v4288_v21 }
 0x93d   :  { %v4290_v25 = vpop.eup %4289 }
 0x93e   :  { %4291 = vrcp.f32 %v3152_v9  ;;  %v3162_v12 = vadd.f32 1.0, %v4290_v25 }
 0x940   :  { %4293 = vrcp.f32 %v3162_v12 }
 0x94b   :  { %v4292_v39 = vpop.eup %4291 }
 0x94c   :  { %v3165_v41 = vmul.f32 %v4292_v39, %v3143_v22 }
 0x94d   :  { %v4294_v34 = vpop.eup %4293 }
 0x94e   :  { %v3168_v57 = vadd.f32 %v3166_v27, %v3165_v41  ;;  %v3170_v56 = vsub.f32 1.0, %v4294_v34  ;;  %v3172_v36 = vmul.f32 %v4294_v34, %v5557_v6 }
 0x950   :  { %4295 = vtanh.f32 %v3168_v57 }
 0x95d   :  { %v4296_v35 = vpop.eup %4295 }
 0x95e   :  { %v3171_v51 = vmul.f32 %v4296_v35, %v3170_v56 }
 0x960   :  { %v3173_v46 = vadd.f32 %v3172_v36, %v3171_v51 }
 0x962   :  { %v3185_v37 = vadd.f32 %v3183_v42, %v3173_v46 }
 0x964   :  { %v3186_v49 = vmax.f32 %v3185_v37, 0.0 }
 0x966   :  { %v3187_v60 = vpack.c.bf16 %v3186_v49, %v3186_v49 }
 0x968   :  { %4013 = vmatmul.mubr.bf16.vlgmr.msra.gmra.mxu1 %v3187_v60 }
 0xa28   :  { %v3293_v16 = vpop.f32.mrf.mxu1 }
 0xa29   :  { %v3294_v59 = vadd.f32 %v3529_v14, %v3293_v16 }
 0xa2a   :  { %v4014_v52 = vpop.f32.mrf.mxu1 }
 0xa2b   :  { %3300 = vst.msk [vmem:[#allocation3] sm:$0x3] %vm3299_vm6, %v3294_v59 }
 0xa2c   :  { %v3296_v55 = vpop.f32.mrf.mxu1 }
 0xa2d   :  { %4332 = shalt.err (!%p4329_p4)
}
 0xa2e   :  { %3310 = dma.vmem_to_hbm [thread:$0]  %s3308_s6, 32, %s5625_s17, [#allocation4]   ;;  %v4015_v8 = vpop.f32.mrf.mxu1 }
 0xa2f   :  { %4341 = dma.done.wait [#allocation4], 32  }
 0xa30   :  { %4342 = vsyncadd [#allocation4], 4294967264 }
 0xa31   :  { %3314 = vsyncpa [#allocation4], 1 }

</bundles_post_ra>
